<compile_context>
chip_gen: v7x
topology: tpu7x:2x2x1
jax: 0.10.0
libtpu: 0.0.40
codegen_flags: <defaults>
</compile_context>

<pallas_src>
import functools

import jax
import jax.numpy as jnp
from jax import lax
from jax.experimental import pallas as pl
from jax.experimental.pallas import tpu as pltpu

WORD_EMBEDDING_DIM = 100
POS_EMBEDDING_DIM = 25
MLP_HIDDEN_DIM = 50

_LANE = 128


def _round_up(x, m):
    return ((x + m - 1) // m) * m


def _sigmoid(x):
    # exp -> approx reciprocal: two EUP pushes, no full-precision divide on the
    # serial recurrence chain.
    return pl.reciprocal(1.0 + jnp.exp(-x), approx=True)


def _chunk_mask(col, h, chunks):
    """Boolean lane mask that is True on the given H-wide column chunks."""
    m = jnp.zeros(col.shape, jnp.bool_)
    for c in chunks:
        m = m | ((col >= c * h) & (col < (c + 1) * h))
    return m


def _fused_forward_kernel(hidden, mlp_hidden_pad,
                          x_ref, wih0_ref, b0_ref, whh0_ref,
                          wih1_ref, b1_ref, whh1_ref,
                          w1_ref, b1m_ref, w2_ref, b2_ref, o_ref):
    H = hidden
    HP = mlp_hidden_pad
    S = o_ref.shape[0]

    # ---- hoisted static lane masks (built once, reused by every step).
    col8 = lax.broadcasted_iota(jnp.int32, (1, 8 * H), 1)
    # gate column layout: [i_f, i_b, f_f, f_b, o_f, o_b, g_f, g_b]
    bwd_mask = _chunk_mask(col8, H, (1, 3, 5, 7))     # backward-direction columns
    sig_mask = col8 < 6 * H                           # sigmoid region (i, f, o)
    col2 = lax.broadcasted_iota(jnp.int32, (1, 2 * H), 1)
    fwd_half = col2 < H                               # fwd half of fused state

    def run_bilstm(proj, whh_bf16):
        """proj: (S, 8H) f32 gate pre-activations for BOTH directions
        (columns already in fused layout). whh_bf16: (2H, 8H) block-diagonal
        recurrent weight. Returns (S, 2H) f32 bidirectional hidden states in
        positional order. Single unrolled loop: fwd processes position s,
        bwd processes position S-1-s in the same iteration."""
        h = jnp.zeros((1, 2 * H), jnp.float32)
        c = jnp.zeros((1, 2 * H), jnp.float32)
        hs = []
        for s in range(S):
            # per-step gate input: fwd columns from row s, bwd from row S-1-s
            gin = jnp.where(bwd_mask, proj[S - 1 - s:S - s, :], proj[s:s + 1, :])
            gates = gin + jnp.dot(h.astype(jnp.bfloat16), whh_bf16,
                                  preferred_element_type=jnp.float32)   # (1, 8H)
            # one sigmoid + one tanh over the full gate vector, lane-mask select
            act = jnp.where(sig_mask, _sigmoid(gates), jnp.tanh(gates))
            i_g = act[:, 0 * H:2 * H]
            f_g = act[:, 2 * H:4 * H]
            o_g = act[:, 4 * H:6 * H]
            g_g = act[:, 6 * H:8 * H]
            c = f_g * c + i_g * g_g
            h = o_g * jnp.tanh(c)
            hs.append(h)
        # re-assemble positional order: out[p] = [h_f(p) | h_b(p)]
        rows = [jnp.where(fwd_half, hs[p], hs[S - 1 - p]) for p in range(S)]
        return jnp.concatenate(rows, axis=0)          # (S, 2H) f32

    # ---- LSTM layer 0: one batched (fwd+bwd) input projection on the MXU.
    proj0 = jnp.dot(x_ref[...], wih0_ref[...],
                    preferred_element_type=jnp.float32) + b0_ref[...]   # (S, 8H)
    out0 = run_bilstm(proj0, whh0_ref[...])                             # (S, 2H)

    # ---- LSTM layer 1.
    proj1 = jnp.dot(out0.astype(jnp.bfloat16), wih1_ref[...],
                    preferred_element_type=jnp.float32) + b1_ref[...]   # (S, 8H)
    lstm_out = run_bilstm(proj1, whh1_ref[...])                         # (S, 2H)

    # ---- pair scorer: one fused (2H, 2*HP) matmul, then pairwise broadcast.
    ab = jnp.dot(lstm_out.astype(jnp.bfloat16), w1_ref[...],
                 preferred_element_type=jnp.float32)                    # (S, 2*HP)
    a = ab[:, :HP]                                                      # W1a v_i
    b = ab[:, HP:]                                                      # W1b v_j
    hp = jnp.maximum(a[:, None, :] + b[None, :, :] + b1m_ref[...][None, :, :], 0.0)
    scores = jnp.sum(hp * w2_ref[...][None, :, :], axis=-1) + b2_ref[0]  # (S, S)
    rows_i = lax.broadcasted_iota(jnp.int32, (S, S), 0)
    cols_j = lax.broadcasted_iota(jnp.int32, (S, S), 1)
    o_ref[...] = jnp.where(rows_i == cols_j, jnp.float32(0.0), scores)


def fused_forward(x, params, hidden_dim):
    """x: (S, 125) f32 concatenated embeddings -> (S, S) f32 scores."""
    S, in_dim = x.shape
    H = hidden_dim
    K0 = _round_up(in_dim, _LANE)                 # 125 -> 128 (clean vreg tiles)
    HP = _round_up(MLP_HIDDEN_DIM, 64)            # 50 -> 64   (padded with zeros)

    x_pad = jnp.pad(x.astype(jnp.float32),
                    ((0, 0), (0, K0 - in_dim))).astype(jnp.bfloat16)     # (S, 128)

    def split_ifgo(w_t):
        # w_t: (rows, 4H), PyTorch gate column order [i, f, g, o]
        return (w_t[:, 0 * H:1 * H], w_t[:, 1 * H:2 * H],
                w_t[:, 2 * H:3 * H], w_t[:, 3 * H:4 * H])

    def pack_layer(lp, k_pad):
        # Fused gate column layout: [i_f, i_b, f_f, f_b, o_f, o_b, g_f, g_b]
        i_f, f_f, g_f, o_f = split_ifgo(lp["w_ih_f"].T)                  # (fin, H)
        i_b, f_b, g_b, o_b = split_ifgo(lp["w_ih_b"].T)
        wih = jnp.concatenate([i_f, i_b, f_f, f_b, o_f, o_b, g_f, g_b], axis=1)
        fin = wih.shape[0]
        wih = jnp.pad(wih, ((0, k_pad - fin), (0, 0))).astype(jnp.bfloat16)  # (k_pad, 8H)

        bi_f, bf_f, bg_f, bo_f = split_ifgo((lp["b_ih_f"] + lp["b_hh_f"])[None, :])
        bi_b, bf_b, bg_b, bo_b = split_ifgo((lp["b_ih_b"] + lp["b_hh_b"])[None, :])
        b = jnp.concatenate([bi_f, bi_b, bf_f, bf_b, bo_f, bo_b, bg_f, bg_b],
                            axis=1).astype(jnp.float32)                 # (1, 8H)

        # Block-diagonal recurrent weight: rows 0:H = fwd h, rows H:2H = bwd h.
        hi_f, hf_f, hg_f, ho_f = split_ifgo(lp["w_hh_f"].T)              # (H, H)
        hi_b, hf_b, hg_b, ho_b = split_ifgo(lp["w_hh_b"].T)
        zH = jnp.zeros((H, H), jnp.float32)
        top = jnp.concatenate([hi_f, zH, hf_f, zH, ho_f, zH, hg_f, zH], axis=1)
        bot = jnp.concatenate([zH, hi_b, zH, hf_b, zH, ho_b, zH, hg_b], axis=1)
        whh = jnp.concatenate([top, bot], axis=0).astype(jnp.bfloat16)   # (2H, 8H)
        return wih, b, whh

    wih0, b0, whh0 = pack_layer(params["lstm"][0], K0)
    wih1, b1, whh1 = pack_layer(params["lstm"][1], 2 * H)

    D = 2 * H
    pad = HP - MLP_HIDDEN_DIM
    w1a = jnp.pad(params["mlp_w1"][:, :D].T, ((0, 0), (0, pad)))          # (2H, HP)
    w1b = jnp.pad(params["mlp_w1"][:, D:].T, ((0, 0), (0, pad)))          # (2H, HP)
    w1cat = jnp.concatenate([w1a, w1b], axis=1).astype(jnp.bfloat16)      # (2H, 2*HP)
    b1m = jnp.pad(params["mlp_b1"], (0, pad))[None, :].astype(jnp.float32)  # (1, HP)
    w2 = jnp.pad(params["mlp_w2"][0], (0, pad))[None, :].astype(jnp.float32)
    b2 = params["mlp_b2"].astype(jnp.float32)                             # (1,) scalar

    def vmem(shape):
        return pl.BlockSpec(shape, lambda i, _s=shape: (0,) * len(_s))

    kernel = functools.partial(_fused_forward_kernel, H, HP)
    return pl.pallas_call(
        kernel,
        out_shape=jax.ShapeDtypeStruct((S, S), jnp.float32),
        grid=(1,),
        in_specs=[
            vmem(x_pad.shape),
            vmem(wih0.shape), vmem(b0.shape), vmem(whh0.shape),
            vmem(wih1.shape), vmem(b1.shape), vmem(whh1.shape),
            vmem(w1cat.shape), vmem(b1m.shape), vmem(w2.shape),
            pl.BlockSpec(memory_space=pltpu.MemorySpace.SMEM),   # b2 scalar in SMEM
        ],
        out_specs=pl.BlockSpec((S, S), lambda i: (0, 0)),
        compiler_params=pltpu.CompilerParams(dimension_semantics=("arbitrary",)),
    )(x_pad, wih0, b0, whh0, wih1, b1, whh1, w1cat, b1m, w2, b2)


# ----------------------------------------------------------------------------
# Parameter initialization (deterministic, shapes from DnnDependencyParser.__init__)
# ----------------------------------------------------------------------------
def init_params(key, word_vocab, tag_vocab, hidden_dim):
    ks = list(jax.random.split(key, 32))
    nxt = iter(ks)
    in_dim = WORD_EMBEDDING_DIM + POS_EMBEDDING_DIM   # 125
    params = {
        "word_emb": jax.random.normal(next(nxt), (word_vocab, WORD_EMBEDDING_DIM), jnp.float32),
        "pos_emb": jax.random.normal(next(nxt), (tag_vocab, POS_EMBEDDING_DIM), jnp.float32),
    }
    k_lstm = 1.0 / jnp.sqrt(hidden_dim)
    layers = []
    for layer in range(2):
        fin = in_dim if layer == 0 else 2 * hidden_dim
        lp = {}
        for d in ("f", "b"):
            lp[f"w_ih_{d}"] = jax.random.uniform(next(nxt), (4 * hidden_dim, fin), jnp.float32, -k_lstm, k_lstm)
            lp[f"w_hh_{d}"] = jax.random.uniform(next(nxt), (4 * hidden_dim, hidden_dim), jnp.float32, -k_lstm, k_lstm)
            lp[f"b_ih_{d}"] = jax.random.uniform(next(nxt), (4 * hidden_dim,), jnp.float32, -k_lstm, k_lstm)
            lp[f"b_hh_{d}"] = jax.random.uniform(next(nxt), (4 * hidden_dim,), jnp.float32, -k_lstm, k_lstm)
        layers.append(lp)
    params["lstm"] = layers
    # not_efficientMLP(lstm_dim=2*hidden_dim, MLP_HIDDEN_DIM):
    #   first_linear : Linear(2*lstm_dim = 4*hidden_dim -> 50)
    #   second_mlp   : Linear(50 -> 1)
    lstm_dim = 2 * hidden_dim
    k1 = 1.0 / jnp.sqrt(2 * lstm_dim)
    k2 = 1.0 / jnp.sqrt(MLP_HIDDEN_DIM)
    params["mlp_w1"] = jax.random.uniform(next(nxt), (MLP_HIDDEN_DIM, 2 * lstm_dim), jnp.float32, -k1, k1)
    params["mlp_b1"] = jax.random.uniform(next(nxt), (MLP_HIDDEN_DIM,), jnp.float32, -k1, k1)
    params["mlp_w2"] = jax.random.uniform(next(nxt), (1, MLP_HIDDEN_DIM), jnp.float32, -k2, k2)
    params["mlp_b2"] = jax.random.uniform(next(nxt), (1,), jnp.float32, -k2, k2)
    return params


# ----------------------------------------------------------------------------
# Full forward (mirrors DnnDependencyParser.forward)
# ----------------------------------------------------------------------------
def forward(params, word_idx, pos_idx, head_tensor, hidden_dim):
    # word_idx, pos_idx: (1, S) int32   (head_tensor unused in forward, as in torch)
    del head_tensor
    e_w = params["word_emb"][word_idx]                      # (1, S, 100)
    e_p = params["pos_emb"][pos_idx]                        # (1, S, 25)
    embeds = jnp.concatenate([e_w, e_p], axis=2)            # (1, S, 125)
    assert embeds.shape[0] == 1 and embeds.shape[2] == WORD_EMBEDDING_DIM + POS_EMBEDDING_DIM
    x = embeds.reshape(embeds.shape[1], -1)                 # (S, 125)  (batch=1 view)
    return fused_forward(x, params, hidden_dim)             # (S, S) scores


if __name__ == "__main__":
    SEQ = 8
    HIDDEN_DIM = 32
    WORD_VOCAB = 64
    TAG_VOCAB = 16

    key = jax.random.PRNGKey(0)
    k_params, k_w, k_p, k_h = jax.random.split(key, 4)

    params = init_params(k_params, WORD_VOCAB, TAG_VOCAB, HIDDEN_DIM)
    word_idx = jax.random.randint(k_w, (1, SEQ), 0, WORD_VOCAB, dtype=jnp.int32)
    pos_idx = jax.random.randint(k_p, (1, SEQ), 0, TAG_VOCAB, dtype=jnp.int32)
    head_tensor = jax.random.randint(k_h, (1, SEQ), 0, SEQ, dtype=jnp.int32)

    fwd = jax.jit(forward, static_argnums=(4,))
    scores = fwd(params, word_idx, pos_idx, head_tensor, HIDDEN_DIM)
    scores = jax.block_until_ready(scores)

    assert scores.shape == (SEQ, SEQ)
    assert scores.dtype == jnp.float32
    assert bool(jnp.all(jnp.isfinite(scores)))
    assert bool(jnp.all(jnp.diag(scores) == 0.0))
    print("KERNEL_OK")
</pallas_src>

<mosaic_0001>
module attributes {stable_mosaic.version = 11 : i64} {
  func.func @_fused_forward_kernel(%arg0: i32, %arg1: memref<8x128xbf16, #tpu.memory_space<vmem>>, %arg2: memref<128x256xbf16, #tpu.memory_space<vmem>>, %arg3: memref<1x256xf32, #tpu.memory_space<vmem>>, %arg4: memref<64x256xbf16, #tpu.memory_space<vmem>>, %arg5: memref<64x256xbf16, #tpu.memory_space<vmem>>, %arg6: memref<1x256xf32, #tpu.memory_space<vmem>>, %arg7: memref<64x256xbf16, #tpu.memory_space<vmem>>, %arg8: memref<64x128xbf16, #tpu.memory_space<vmem>>, %arg9: memref<1x64xf32, #tpu.memory_space<vmem>>, %arg10: memref<1x64xf32, #tpu.memory_space<vmem>>, %arg11: memref<1xf32, #tpu.memory_space<smem>>, %arg12: memref<8x8xf32, #tpu.memory_space<vmem>>) attributes {dimension_semantics = [#tpu.dimension_semantics<arbitrary>], iteration_bounds = array<i64: 1>, scalar_prefetch = 0 : i64, scratch_operands = 0 : i64, tpu.core_type = #tpu.core_type<tc>, window_params = [{pipeline_mode = #tpu.pipeline_mode<synchronous>, transform_indices = @transform_0, window_bounds = array<i64: 8, 128>}, {pipeline_mode = #tpu.pipeline_mode<synchronous>, transform_indices = @transform_1, window_bounds = array<i64: 128, 256>}, {pipeline_mode = #tpu.pipeline_mode<synchronous>, transform_indices = @transform_2, window_bounds = array<i64: 1, 256>}, {pipeline_mode = #tpu.pipeline_mode<synchronous>, transform_indices = @transform_3, window_bounds = array<i64: 64, 256>}, {pipeline_mode = #tpu.pipeline_mode<synchronous>, transform_indices = @transform_4, window_bounds = array<i64: 64, 256>}, {pipeline_mode = #tpu.pipeline_mode<synchronous>, transform_indices = @transform_5, window_bounds = array<i64: 1, 256>}, {pipeline_mode = #tpu.pipeline_mode<synchronous>, transform_indices = @transform_6, window_bounds = array<i64: 64, 256>}, {pipeline_mode = #tpu.pipeline_mode<synchronous>, transform_indices = @transform_7, window_bounds = array<i64: 64, 128>}, {pipeline_mode = #tpu.pipeline_mode<synchronous>, transform_indices = @transform_8, window_bounds = array<i64: 1, 64>}, {pipeline_mode = #tpu.pipeline_mode<synchronous>, transform_indices = @transform_9, window_bounds = array<i64: 1, 64>}, {transform_indices = @transform_10, window_bounds = array<i64: 1>}, {pipeline_mode = #tpu.pipeline_mode<synchronous>, transform_indices = @transform_11, window_bounds = array<i64: 8, 8>}]} {
    %0 = tpu.iota {dimensions = array<i32: 1>} : vector<1x256xi32>
    %false = arith.constant false
    %1 = vector.broadcast %false : i1 to vector<1x256xi1>
    %c32_i32 = arith.constant 32 : i32
    %2 = vector.broadcast %c32_i32 : i32 to vector<1x256xi32>
    %3 = arith.cmpi sge, %0, %2 : vector<1x256xi32>
    %c64_i32 = arith.constant 64 : i32
    %4 = vector.broadcast %c64_i32 : i32 to vector<1x256xi32>
    %5 = arith.cmpi slt, %0, %4 : vector<1x256xi32>
    %6 = arith.andi %3, %5 : vector<1x256xi1>
    %7 = arith.ori %1, %6 : vector<1x256xi1>
    %c96_i32 = arith.constant 96 : i32
    %8 = vector.broadcast %c96_i32 : i32 to vector<1x256xi32>
    %9 = arith.cmpi sge, %0, %8 : vector<1x256xi32>
    %c128_i32 = arith.constant 128 : i32
    %10 = vector.broadcast %c128_i32 : i32 to vector<1x256xi32>
    %11 = arith.cmpi slt, %0, %10 : vector<1x256xi32>
    %12 = arith.andi %9, %11 : vector<1x256xi1>
    %13 = arith.ori %7, %12 : vector<1x256xi1>
    %c160_i32 = arith.constant 160 : i32
    %14 = vector.broadcast %c160_i32 : i32 to vector<1x256xi32>
    %15 = arith.cmpi sge, %0, %14 : vector<1x256xi32>
    %c192_i32 = arith.constant 192 : i32
    %16 = vector.broadcast %c192_i32 : i32 to vector<1x256xi32>
    %17 = arith.cmpi slt, %0, %16 : vector<1x256xi32>
    %18 = arith.andi %15, %17 : vector<1x256xi1>
    %19 = arith.ori %13, %18 : vector<1x256xi1>
    %c224_i32 = arith.constant 224 : i32
    %20 = vector.broadcast %c224_i32 : i32 to vector<1x256xi32>
    %21 = arith.cmpi sge, %0, %20 : vector<1x256xi32>
    %c256_i32 = arith.constant 256 : i32
    %22 = vector.broadcast %c256_i32 : i32 to vector<1x256xi32>
    %23 = arith.cmpi slt, %0, %22 : vector<1x256xi32>
    %24 = arith.andi %21, %23 : vector<1x256xi1>
    %25 = arith.ori %19, %24 : vector<1x256xi1>
    %c192_i32_0 = arith.constant 192 : i32
    %26 = vector.broadcast %c192_i32_0 : i32 to vector<1x256xi32>
    %27 = arith.cmpi slt, %0, %26 : vector<1x256xi32>
    %28 = tpu.iota {dimensions = array<i32: 1>} : vector<1x64xi32>
    %c32_i32_1 = arith.constant 32 : i32
    %29 = vector.broadcast %c32_i32_1 : i32 to vector<1x64xi32>
    %30 = arith.cmpi slt, %28, %29 : vector<1x64xi32>
    %c0 = arith.constant 0 : index
    %c0_2 = arith.constant 0 : index
    %31 = vector.load %arg1[%c0, %c0_2] : memref<8x128xbf16, #tpu.memory_space<vmem>>, vector<8x128xbf16>
    %c0_3 = arith.constant 0 : index
    %c0_4 = arith.constant 0 : index
    %32 = vector.load %arg2[%c0_3, %c0_4] : memref<128x256xbf16, #tpu.memory_space<vmem>>, vector<128x256xbf16>
    %cst = arith.constant dense<0.000000e+00> : vector<8x256xf32>
    %33 = tpu.matmul %31, %32, %cst {dimension_numbers = #tpu.dot_dimension_numbers<[1], [0], [0], [1], [0, 0, 1, 1], [], []>} : vector<8x128xbf16>, vector<128x256xbf16>, vector<8x256xf32> -> vector<8x256xf32>
    %c0_5 = arith.constant 0 : index
    %c0_6 = arith.constant 0 : index
    %34 = vector.load %arg3[%c0_5, %c0_6] : memref<1x256xf32, #tpu.memory_space<vmem>>, vector<1x256xf32>
    %35 = vector.broadcast %34 : vector<1x256xf32> to vector<8x256xf32>
    %36 = arith.addf %33, %35 : vector<8x256xf32>
    %c0_7 = arith.constant 0 : index
    %c0_8 = arith.constant 0 : index
    %37 = vector.load %arg4[%c0_7, %c0_8] : memref<64x256xbf16, #tpu.memory_space<vmem>>, vector<64x256xbf16>
    %cst_9 = arith.constant 0.000000e+00 : f32
    %38 = vector.broadcast %cst_9 : f32 to vector<1x64xf32>
    %cst_10 = arith.constant 0.000000e+00 : f32
    %39 = vector.broadcast %cst_10 : f32 to vector<1x64xf32>
    %40 = vector.extract_strided_slice %36 {offsets = [7, 0], sizes = [1, 256], strides = [1, 1]} : vector<8x256xf32> to vector<1x256xf32>
    %41 = vector.extract_strided_slice %36 {offsets = [0, 0], sizes = [1, 256], strides = [1, 1]} : vector<8x256xf32> to vector<1x256xf32>
    %42 = arith.select %25, %40, %41 : vector<1x256xi1>, vector<1x256xf32>
    %43 = arith.truncf %38 : vector<1x64xf32> to vector<1x64xbf16>
    %cst_11 = arith.constant dense<0.000000e+00> : vector<1x256xf32>
    %44 = tpu.matmul %43, %37, %cst_11 {dimension_numbers = #tpu.dot_dimension_numbers<[1], [0], [0], [1], [0, 0, 1, 1], [], []>} : vector<1x64xbf16>, vector<64x256xbf16>, vector<1x256xf32> -> vector<1x256xf32>
    %45 = arith.addf %42, %44 : vector<1x256xf32>
    %cst_12 = arith.constant 0.000000e+00 : f32
    %46 = vector.broadcast %cst_12 : f32 to vector<1x256xf32>
    %47 = arith.subf %46, %45 : vector<1x256xf32>
    %48 = math.exp %47 : vector<1x256xf32>
    %cst_13 = arith.constant 1.000000e+00 : f32
    %49 = vector.broadcast %cst_13 : f32 to vector<1x256xf32>
    %50 = arith.addf %49, %48 : vector<1x256xf32>
    %51 = tpu.reciprocal %50 {approx = true} : vector<1x256xf32> -> vector<1x256xf32>
    %52 = math.tanh %45 : vector<1x256xf32>
    %53 = arith.select %27, %51, %52 : vector<1x256xi1>, vector<1x256xf32>
    %54 = vector.extract_strided_slice %53 {offsets = [0, 0], sizes = [1, 64], strides = [1, 1]} : vector<1x256xf32> to vector<1x64xf32>
    %55 = vector.extract_strided_slice %53 {offsets = [0, 64], sizes = [1, 64], strides = [1, 1]} : vector<1x256xf32> to vector<1x64xf32>
    %56 = vector.extract_strided_slice %53 {offsets = [0, 128], sizes = [1, 64], strides = [1, 1]} : vector<1x256xf32> to vector<1x64xf32>
    %57 = vector.extract_strided_slice %53 {offsets = [0, 192], sizes = [1, 64], strides = [1, 1]} : vector<1x256xf32> to vector<1x64xf32>
    %58 = arith.mulf %55, %39 : vector<1x64xf32>
    %59 = arith.mulf %54, %57 : vector<1x64xf32>
    %60 = arith.addf %58, %59 : vector<1x64xf32>
    %61 = math.tanh %60 : vector<1x64xf32>
    %62 = arith.mulf %56, %61 : vector<1x64xf32>
    %63 = vector.extract_strided_slice %36 {offsets = [6, 0], sizes = [1, 256], strides = [1, 1]} : vector<8x256xf32> to vector<1x256xf32>
    %64 = vector.extract_strided_slice %36 {offsets = [1, 0], sizes = [1, 256], strides = [1, 1]} : vector<8x256xf32> to vector<1x256xf32>
    %65 = arith.select %25, %63, %64 : vector<1x256xi1>, vector<1x256xf32>
    %66 = arith.truncf %62 : vector<1x64xf32> to vector<1x64xbf16>
    %cst_14 = arith.constant dense<0.000000e+00> : vector<1x256xf32>
    %67 = tpu.matmul %66, %37, %cst_14 {dimension_numbers = #tpu.dot_dimension_numbers<[1], [0], [0], [1], [0, 0, 1, 1], [], []>} : vector<1x64xbf16>, vector<64x256xbf16>, vector<1x256xf32> -> vector<1x256xf32>
    %68 = arith.addf %65, %67 : vector<1x256xf32>
    %cst_15 = arith.constant 0.000000e+00 : f32
    %69 = vector.broadcast %cst_15 : f32 to vector<1x256xf32>
    %70 = arith.subf %69, %68 : vector<1x256xf32>
    %71 = math.exp %70 : vector<1x256xf32>
    %cst_16 = arith.constant 1.000000e+00 : f32
    %72 = vector.broadcast %cst_16 : f32 to vector<1x256xf32>
    %73 = arith.addf %72, %71 : vector<1x256xf32>
    %74 = tpu.reciprocal %73 {approx = true} : vector<1x256xf32> -> vector<1x256xf32>
    %75 = math.tanh %68 : vector<1x256xf32>
    %76 = arith.select %27, %74, %75 : vector<1x256xi1>, vector<1x256xf32>
    %77 = vector.extract_strided_slice %76 {offsets = [0, 0], sizes = [1, 64], strides = [1, 1]} : vector<1x256xf32> to vector<1x64xf32>
    %78 = vector.extract_strided_slice %76 {offsets = [0, 64], sizes = [1, 64], strides = [1, 1]} : vector<1x256xf32> to vector<1x64xf32>
    %79 = vector.extract_strided_slice %76 {offsets = [0, 128], sizes = [1, 64], strides = [1, 1]} : vector<1x256xf32> to vector<1x64xf32>
    %80 = vector.extract_strided_slice %76 {offsets = [0, 192], sizes = [1, 64], strides = [1, 1]} : vector<1x256xf32> to vector<1x64xf32>
    %81 = arith.mulf %78, %60 : vector<1x64xf32>
    %82 = arith.mulf %77, %80 : vector<1x64xf32>
    %83 = arith.addf %81, %82 : vector<1x64xf32>
    %84 = math.tanh %83 : vector<1x64xf32>
    %85 = arith.mulf %79, %84 : vector<1x64xf32>
    %86 = vector.extract_strided_slice %36 {offsets = [5, 0], sizes = [1, 256], strides = [1, 1]} : vector<8x256xf32> to vector<1x256xf32>
    %87 = vector.extract_strided_slice %36 {offsets = [2, 0], sizes = [1, 256], strides = [1, 1]} : vector<8x256xf32> to vector<1x256xf32>
    %88 = arith.select %25, %86, %87 : vector<1x256xi1>, vector<1x256xf32>
    %89 = arith.truncf %85 : vector<1x64xf32> to vector<1x64xbf16>
    %cst_17 = arith.constant dense<0.000000e+00> : vector<1x256xf32>
    %90 = tpu.matmul %89, %37, %cst_17 {dimension_numbers = #tpu.dot_dimension_numbers<[1], [0], [0], [1], [0, 0, 1, 1], [], []>} : vector<1x64xbf16>, vector<64x256xbf16>, vector<1x256xf32> -> vector<1x256xf32>
    %91 = arith.addf %88, %90 : vector<1x256xf32>
    %cst_18 = arith.constant 0.000000e+00 : f32
    %92 = vector.broadcast %cst_18 : f32 to vector<1x256xf32>
    %93 = arith.subf %92, %91 : vector<1x256xf32>
    %94 = math.exp %93 : vector<1x256xf32>
    %cst_19 = arith.constant 1.000000e+00 : f32
    %95 = vector.broadcast %cst_19 : f32 to vector<1x256xf32>
    %96 = arith.addf %95, %94 : vector<1x256xf32>
    %97 = tpu.reciprocal %96 {approx = true} : vector<1x256xf32> -> vector<1x256xf32>
    %98 = math.tanh %91 : vector<1x256xf32>
    %99 = arith.select %27, %97, %98 : vector<1x256xi1>, vector<1x256xf32>
    %100 = vector.extract_strided_slice %99 {offsets = [0, 0], sizes = [1, 64], strides = [1, 1]} : vector<1x256xf32> to vector<1x64xf32>
    %101 = vector.extract_strided_slice %99 {offsets = [0, 64], sizes = [1, 64], strides = [1, 1]} : vector<1x256xf32> to vector<1x64xf32>
    %102 = vector.extract_strided_slice %99 {offsets = [0, 128], sizes = [1, 64], strides = [1, 1]} : vector<1x256xf32> to vector<1x64xf32>
    %103 = vector.extract_strided_slice %99 {offsets = [0, 192], sizes = [1, 64], strides = [1, 1]} : vector<1x256xf32> to vector<1x64xf32>
    %104 = arith.mulf %101, %83 : vector<1x64xf32>
    %105 = arith.mulf %100, %103 : vector<1x64xf32>
    %106 = arith.addf %104, %105 : vector<1x64xf32>
    %107 = math.tanh %106 : vector<1x64xf32>
    %108 = arith.mulf %102, %107 : vector<1x64xf32>
    %109 = vector.extract_strided_slice %36 {offsets = [4, 0], sizes = [1, 256], strides = [1, 1]} : vector<8x256xf32> to vector<1x256xf32>
    %110 = vector.extract_strided_slice %36 {offsets = [3, 0], sizes = [1, 256], strides = [1, 1]} : vector<8x256xf32> to vector<1x256xf32>
    %111 = arith.select %25, %109, %110 : vector<1x256xi1>, vector<1x256xf32>
    %112 = arith.truncf %108 : vector<1x64xf32> to vector<1x64xbf16>
    %cst_20 = arith.constant dense<0.000000e+00> : vector<1x256xf32>
    %113 = tpu.matmul %112, %37, %cst_20 {dimension_numbers = #tpu.dot_dimension_numbers<[1], [0], [0], [1], [0, 0, 1, 1], [], []>} : vector<1x64xbf16>, vector<64x256xbf16>, vector<1x256xf32> -> vector<1x256xf32>
    %114 = arith.addf %111, %113 : vector<1x256xf32>
    %cst_21 = arith.constant 0.000000e+00 : f32
    %115 = vector.broadcast %cst_21 : f32 to vector<1x256xf32>
    %116 = arith.subf %115, %114 : vector<1x256xf32>
    %117 = math.exp %116 : vector<1x256xf32>
    %cst_22 = arith.constant 1.000000e+00 : f32
    %118 = vector.broadcast %cst_22 : f32 to vector<1x256xf32>
    %119 = arith.addf %118, %117 : vector<1x256xf32>
    %120 = tpu.reciprocal %119 {approx = true} : vector<1x256xf32> -> vector<1x256xf32>
    %121 = math.tanh %114 : vector<1x256xf32>
    %122 = arith.select %27, %120, %121 : vector<1x256xi1>, vector<1x256xf32>
    %123 = vector.extract_strided_slice %122 {offsets = [0, 0], sizes = [1, 64], strides = [1, 1]} : vector<1x256xf32> to vector<1x64xf32>
    %124 = vector.extract_strided_slice %122 {offsets = [0, 64], sizes = [1, 64], strides = [1, 1]} : vector<1x256xf32> to vector<1x64xf32>
    %125 = vector.extract_strided_slice %122 {offsets = [0, 128], sizes = [1, 64], strides = [1, 1]} : vector<1x256xf32> to vector<1x64xf32>
    %126 = vector.extract_strided_slice %122 {offsets = [0, 192], sizes = [1, 64], strides = [1, 1]} : vector<1x256xf32> to vector<1x64xf32>
    %127 = arith.mulf %124, %106 : vector<1x64xf32>
    %128 = arith.mulf %123, %126 : vector<1x64xf32>
    %129 = arith.addf %127, %128 : vector<1x64xf32>
    %130 = math.tanh %129 : vector<1x64xf32>
    %131 = arith.mulf %125, %130 : vector<1x64xf32>
    %132 = vector.extract_strided_slice %36 {offsets = [3, 0], sizes = [1, 256], strides = [1, 1]} : vector<8x256xf32> to vector<1x256xf32>
    %133 = vector.extract_strided_slice %36 {offsets = [4, 0], sizes = [1, 256], strides = [1, 1]} : vector<8x256xf32> to vector<1x256xf32>
    %134 = arith.select %25, %132, %133 : vector<1x256xi1>, vector<1x256xf32>
    %135 = arith.truncf %131 : vector<1x64xf32> to vector<1x64xbf16>
    %cst_23 = arith.constant dense<0.000000e+00> : vector<1x256xf32>
    %136 = tpu.matmul %135, %37, %cst_23 {dimension_numbers = #tpu.dot_dimension_numbers<[1], [0], [0], [1], [0, 0, 1, 1], [], []>} : vector<1x64xbf16>, vector<64x256xbf16>, vector<1x256xf32> -> vector<1x256xf32>
    %137 = arith.addf %134, %136 : vector<1x256xf32>
    %cst_24 = arith.constant 0.000000e+00 : f32
    %138 = vector.broadcast %cst_24 : f32 to vector<1x256xf32>
    %139 = arith.subf %138, %137 : vector<1x256xf32>
    %140 = math.exp %139 : vector<1x256xf32>
    %cst_25 = arith.constant 1.000000e+00 : f32
    %141 = vector.broadcast %cst_25 : f32 to vector<1x256xf32>
    %142 = arith.addf %141, %140 : vector<1x256xf32>
    %143 = tpu.reciprocal %142 {approx = true} : vector<1x256xf32> -> vector<1x256xf32>
    %144 = math.tanh %137 : vector<1x256xf32>
    %145 = arith.select %27, %143, %144 : vector<1x256xi1>, vector<1x256xf32>
    %146 = vector.extract_strided_slice %145 {offsets = [0, 0], sizes = [1, 64], strides = [1, 1]} : vector<1x256xf32> to vector<1x64xf32>
    %147 = vector.extract_strided_slice %145 {offsets = [0, 64], sizes = [1, 64], strides = [1, 1]} : vector<1x256xf32> to vector<1x64xf32>
    %148 = vector.extract_strided_slice %145 {offsets = [0, 128], sizes = [1, 64], strides = [1, 1]} : vector<1x256xf32> to vector<1x64xf32>
    %149 = vector.extract_strided_slice %145 {offsets = [0, 192], sizes = [1, 64], strides = [1, 1]} : vector<1x256xf32> to vector<1x64xf32>
    %150 = arith.mulf %147, %129 : vector<1x64xf32>
    %151 = arith.mulf %146, %149 : vector<1x64xf32>
    %152 = arith.addf %150, %151 : vector<1x64xf32>
    %153 = math.tanh %152 : vector<1x64xf32>
    %154 = arith.mulf %148, %153 : vector<1x64xf32>
    %155 = vector.extract_strided_slice %36 {offsets = [2, 0], sizes = [1, 256], strides = [1, 1]} : vector<8x256xf32> to vector<1x256xf32>
    %156 = vector.extract_strided_slice %36 {offsets = [5, 0], sizes = [1, 256], strides = [1, 1]} : vector<8x256xf32> to vector<1x256xf32>
    %157 = arith.select %25, %155, %156 : vector<1x256xi1>, vector<1x256xf32>
    %158 = arith.truncf %154 : vector<1x64xf32> to vector<1x64xbf16>
    %cst_26 = arith.constant dense<0.000000e+00> : vector<1x256xf32>
    %159 = tpu.matmul %158, %37, %cst_26 {dimension_numbers = #tpu.dot_dimension_numbers<[1], [0], [0], [1], [0, 0, 1, 1], [], []>} : vector<1x64xbf16>, vector<64x256xbf16>, vector<1x256xf32> -> vector<1x256xf32>
    %160 = arith.addf %157, %159 : vector<1x256xf32>
    %cst_27 = arith.constant 0.000000e+00 : f32
    %161 = vector.broadcast %cst_27 : f32 to vector<1x256xf32>
    %162 = arith.subf %161, %160 : vector<1x256xf32>
    %163 = math.exp %162 : vector<1x256xf32>
    %cst_28 = arith.constant 1.000000e+00 : f32
    %164 = vector.broadcast %cst_28 : f32 to vector<1x256xf32>
    %165 = arith.addf %164, %163 : vector<1x256xf32>
    %166 = tpu.reciprocal %165 {approx = true} : vector<1x256xf32> -> vector<1x256xf32>
    %167 = math.tanh %160 : vector<1x256xf32>
    %168 = arith.select %27, %166, %167 : vector<1x256xi1>, vector<1x256xf32>
    %169 = vector.extract_strided_slice %168 {offsets = [0, 0], sizes = [1, 64], strides = [1, 1]} : vector<1x256xf32> to vector<1x64xf32>
    %170 = vector.extract_strided_slice %168 {offsets = [0, 64], sizes = [1, 64], strides = [1, 1]} : vector<1x256xf32> to vector<1x64xf32>
    %171 = vector.extract_strided_slice %168 {offsets = [0, 128], sizes = [1, 64], strides = [1, 1]} : vector<1x256xf32> to vector<1x64xf32>
    %172 = vector.extract_strided_slice %168 {offsets = [0, 192], sizes = [1, 64], strides = [1, 1]} : vector<1x256xf32> to vector<1x64xf32>
    %173 = arith.mulf %170, %152 : vector<1x64xf32>
    %174 = arith.mulf %169, %172 : vector<1x64xf32>
    %175 = arith.addf %173, %174 : vector<1x64xf32>
    %176 = math.tanh %175 : vector<1x64xf32>
    %177 = arith.mulf %171, %176 : vector<1x64xf32>
    %178 = vector.extract_strided_slice %36 {offsets = [1, 0], sizes = [1, 256], strides = [1, 1]} : vector<8x256xf32> to vector<1x256xf32>
    %179 = vector.extract_strided_slice %36 {offsets = [6, 0], sizes = [1, 256], strides = [1, 1]} : vector<8x256xf32> to vector<1x256xf32>
    %180 = arith.select %25, %178, %179 : vector<1x256xi1>, vector<1x256xf32>
    %181 = arith.truncf %177 : vector<1x64xf32> to vector<1x64xbf16>
    %cst_29 = arith.constant dense<0.000000e+00> : vector<1x256xf32>
    %182 = tpu.matmul %181, %37, %cst_29 {dimension_numbers = #tpu.dot_dimension_numbers<[1], [0], [0], [1], [0, 0, 1, 1], [], []>} : vector<1x64xbf16>, vector<64x256xbf16>, vector<1x256xf32> -> vector<1x256xf32>
    %183 = arith.addf %180, %182 : vector<1x256xf32>
    %cst_30 = arith.constant 0.000000e+00 : f32
    %184 = vector.broadcast %cst_30 : f32 to vector<1x256xf32>
    %185 = arith.subf %184, %183 : vector<1x256xf32>
    %186 = math.exp %185 : vector<1x256xf32>
    %cst_31 = arith.constant 1.000000e+00 : f32
    %187 = vector.broadcast %cst_31 : f32 to vector<1x256xf32>
    %188 = arith.addf %187, %186 : vector<1x256xf32>
    %189 = tpu.reciprocal %188 {approx = true} : vector<1x256xf32> -> vector<1x256xf32>
    %190 = math.tanh %183 : vector<1x256xf32>
    %191 = arith.select %27, %189, %190 : vector<1x256xi1>, vector<1x256xf32>
    %192 = vector.extract_strided_slice %191 {offsets = [0, 0], sizes = [1, 64], strides = [1, 1]} : vector<1x256xf32> to vector<1x64xf32>
    %193 = vector.extract_strided_slice %191 {offsets = [0, 64], sizes = [1, 64], strides = [1, 1]} : vector<1x256xf32> to vector<1x64xf32>
    %194 = vector.extract_strided_slice %191 {offsets = [0, 128], sizes = [1, 64], strides = [1, 1]} : vector<1x256xf32> to vector<1x64xf32>
    %195 = vector.extract_strided_slice %191 {offsets = [0, 192], sizes = [1, 64], strides = [1, 1]} : vector<1x256xf32> to vector<1x64xf32>
    %196 = arith.mulf %193, %175 : vector<1x64xf32>
    %197 = arith.mulf %192, %195 : vector<1x64xf32>
    %198 = arith.addf %196, %197 : vector<1x64xf32>
    %199 = math.tanh %198 : vector<1x64xf32>
    %200 = arith.mulf %194, %199 : vector<1x64xf32>
    %201 = vector.extract_strided_slice %36 {offsets = [0, 0], sizes = [1, 256], strides = [1, 1]} : vector<8x256xf32> to vector<1x256xf32>
    %202 = vector.extract_strided_slice %36 {offsets = [7, 0], sizes = [1, 256], strides = [1, 1]} : vector<8x256xf32> to vector<1x256xf32>
    %203 = arith.select %25, %201, %202 : vector<1x256xi1>, vector<1x256xf32>
    %204 = arith.truncf %200 : vector<1x64xf32> to vector<1x64xbf16>
    %cst_32 = arith.constant dense<0.000000e+00> : vector<1x256xf32>
    %205 = tpu.matmul %204, %37, %cst_32 {dimension_numbers = #tpu.dot_dimension_numbers<[1], [0], [0], [1], [0, 0, 1, 1], [], []>} : vector<1x64xbf16>, vector<64x256xbf16>, vector<1x256xf32> -> vector<1x256xf32>
    %206 = arith.addf %203, %205 : vector<1x256xf32>
    %cst_33 = arith.constant 0.000000e+00 : f32
    %207 = vector.broadcast %cst_33 : f32 to vector<1x256xf32>
    %208 = arith.subf %207, %206 : vector<1x256xf32>
    %209 = math.exp %208 : vector<1x256xf32>
    %cst_34 = arith.constant 1.000000e+00 : f32
    %210 = vector.broadcast %cst_34 : f32 to vector<1x256xf32>
    %211 = arith.addf %210, %209 : vector<1x256xf32>
    %212 = tpu.reciprocal %211 {approx = true} : vector<1x256xf32> -> vector<1x256xf32>
    %213 = math.tanh %206 : vector<1x256xf32>
    %214 = arith.select %27, %212, %213 : vector<1x256xi1>, vector<1x256xf32>
    %215 = vector.extract_strided_slice %214 {offsets = [0, 0], sizes = [1, 64], strides = [1, 1]} : vector<1x256xf32> to vector<1x64xf32>
    %216 = vector.extract_strided_slice %214 {offsets = [0, 64], sizes = [1, 64], strides = [1, 1]} : vector<1x256xf32> to vector<1x64xf32>
    %217 = vector.extract_strided_slice %214 {offsets = [0, 128], sizes = [1, 64], strides = [1, 1]} : vector<1x256xf32> to vector<1x64xf32>
    %218 = vector.extract_strided_slice %214 {offsets = [0, 192], sizes = [1, 64], strides = [1, 1]} : vector<1x256xf32> to vector<1x64xf32>
    %219 = arith.mulf %216, %198 : vector<1x64xf32>
    %220 = arith.mulf %215, %218 : vector<1x64xf32>
    %221 = arith.addf %219, %220 : vector<1x64xf32>
    %222 = math.tanh %221 : vector<1x64xf32>
    %223 = arith.mulf %217, %222 : vector<1x64xf32>
    %224 = arith.select %30, %62, %223 : vector<1x64xi1>, vector<1x64xf32>
    %225 = arith.select %30, %85, %200 : vector<1x64xi1>, vector<1x64xf32>
    %226 = arith.select %30, %108, %177 : vector<1x64xi1>, vector<1x64xf32>
    %227 = arith.select %30, %131, %154 : vector<1x64xi1>, vector<1x64xf32>
    %228 = arith.select %30, %154, %131 : vector<1x64xi1>, vector<1x64xf32>
    %229 = arith.select %30, %177, %108 : vector<1x64xi1>, vector<1x64xf32>
    %230 = arith.select %30, %200, %85 : vector<1x64xi1>, vector<1x64xf32>
    %231 = arith.select %30, %223, %62 : vector<1x64xi1>, vector<1x64xf32>
    %232 = tpu.concatenate %224, %225, %226, %227, %228, %229, %230, %231 in 0 : vector<1x64xf32>, vector<1x64xf32>, vector<1x64xf32>, vector<1x64xf32>, vector<1x64xf32>, vector<1x64xf32>, vector<1x64xf32>, vector<1x64xf32> -> vector<8x64xf32>
    %233 = arith.truncf %232 : vector<8x64xf32> to vector<8x64xbf16>
    %c0_35 = arith.constant 0 : index
    %c0_36 = arith.constant 0 : index
    %234 = vector.load %arg5[%c0_35, %c0_36] : memref<64x256xbf16, #tpu.memory_space<vmem>>, vector<64x256xbf16>
    %cst_37 = arith.constant dense<0.000000e+00> : vector<8x256xf32>
    %235 = tpu.matmul %233, %234, %cst_37 {dimension_numbers = #tpu.dot_dimension_numbers<[1], [0], [0], [1], [0, 0, 1, 1], [], []>} : vector<8x64xbf16>, vector<64x256xbf16>, vector<8x256xf32> -> vector<8x256xf32>
    %c0_38 = arith.constant 0 : index
    %c0_39 = arith.constant 0 : index
    %236 = vector.load %arg6[%c0_38, %c0_39] : memref<1x256xf32, #tpu.memory_space<vmem>>, vector<1x256xf32>
    %237 = vector.broadcast %236 : vector<1x256xf32> to vector<8x256xf32>
    %238 = arith.addf %235, %237 : vector<8x256xf32>
    %c0_40 = arith.constant 0 : index
    %c0_41 = arith.constant 0 : index
    %239 = vector.load %arg7[%c0_40, %c0_41] : memref<64x256xbf16, #tpu.memory_space<vmem>>, vector<64x256xbf16>
    %cst_42 = arith.constant 0.000000e+00 : f32
    %240 = vector.broadcast %cst_42 : f32 to vector<1x64xf32>
    %cst_43 = arith.constant 0.000000e+00 : f32
    %241 = vector.broadcast %cst_43 : f32 to vector<1x64xf32>
    %242 = vector.extract_strided_slice %238 {offsets = [7, 0], sizes = [1, 256], strides = [1, 1]} : vector<8x256xf32> to vector<1x256xf32>
    %243 = vector.extract_strided_slice %238 {offsets = [0, 0], sizes = [1, 256], strides = [1, 1]} : vector<8x256xf32> to vector<1x256xf32>
    %244 = arith.select %25, %242, %243 : vector<1x256xi1>, vector<1x256xf32>
    %245 = arith.truncf %240 : vector<1x64xf32> to vector<1x64xbf16>
    %cst_44 = arith.constant dense<0.000000e+00> : vector<1x256xf32>
    %246 = tpu.matmul %245, %239, %cst_44 {dimension_numbers = #tpu.dot_dimension_numbers<[1], [0], [0], [1], [0, 0, 1, 1], [], []>} : vector<1x64xbf16>, vector<64x256xbf16>, vector<1x256xf32> -> vector<1x256xf32>
    %247 = arith.addf %244, %246 : vector<1x256xf32>
    %cst_45 = arith.constant 0.000000e+00 : f32
    %248 = vector.broadcast %cst_45 : f32 to vector<1x256xf32>
    %249 = arith.subf %248, %247 : vector<1x256xf32>
    %250 = math.exp %249 : vector<1x256xf32>
    %cst_46 = arith.constant 1.000000e+00 : f32
    %251 = vector.broadcast %cst_46 : f32 to vector<1x256xf32>
    %252 = arith.addf %251, %250 : vector<1x256xf32>
    %253 = tpu.reciprocal %252 {approx = true} : vector<1x256xf32> -> vector<1x256xf32>
    %254 = math.tanh %247 : vector<1x256xf32>
    %255 = arith.select %27, %253, %254 : vector<1x256xi1>, vector<1x256xf32>
    %256 = vector.extract_strided_slice %255 {offsets = [0, 0], sizes = [1, 64], strides = [1, 1]} : vector<1x256xf32> to vector<1x64xf32>
    %257 = vector.extract_strided_slice %255 {offsets = [0, 64], sizes = [1, 64], strides = [1, 1]} : vector<1x256xf32> to vector<1x64xf32>
    %258 = vector.extract_strided_slice %255 {offsets = [0, 128], sizes = [1, 64], strides = [1, 1]} : vector<1x256xf32> to vector<1x64xf32>
    %259 = vector.extract_strided_slice %255 {offsets = [0, 192], sizes = [1, 64], strides = [1, 1]} : vector<1x256xf32> to vector<1x64xf32>
    %260 = arith.mulf %257, %241 : vector<1x64xf32>
    %261 = arith.mulf %256, %259 : vector<1x64xf32>
    %262 = arith.addf %260, %261 : vector<1x64xf32>
    %263 = math.tanh %262 : vector<1x64xf32>
    %264 = arith.mulf %258, %263 : vector<1x64xf32>
    %265 = vector.extract_strided_slice %238 {offsets = [6, 0], sizes = [1, 256], strides = [1, 1]} : vector<8x256xf32> to vector<1x256xf32>
    %266 = vector.extract_strided_slice %238 {offsets = [1, 0], sizes = [1, 256], strides = [1, 1]} : vector<8x256xf32> to vector<1x256xf32>
    %267 = arith.select %25, %265, %266 : vector<1x256xi1>, vector<1x256xf32>
    %268 = arith.truncf %264 : vector<1x64xf32> to vector<1x64xbf16>
    %cst_47 = arith.constant dense<0.000000e+00> : vector<1x256xf32>
    %269 = tpu.matmul %268, %239, %cst_47 {dimension_numbers = #tpu.dot_dimension_numbers<[1], [0], [0], [1], [0, 0, 1, 1], [], []>} : vector<1x64xbf16>, vector<64x256xbf16>, vector<1x256xf32> -> vector<1x256xf32>
    %270 = arith.addf %267, %269 : vector<1x256xf32>
    %cst_48 = arith.constant 0.000000e+00 : f32
    %271 = vector.broadcast %cst_48 : f32 to vector<1x256xf32>
    %272 = arith.subf %271, %270 : vector<1x256xf32>
    %273 = math.exp %272 : vector<1x256xf32>
    %cst_49 = arith.constant 1.000000e+00 : f32
    %274 = vector.broadcast %cst_49 : f32 to vector<1x256xf32>
    %275 = arith.addf %274, %273 : vector<1x256xf32>
    %276 = tpu.reciprocal %275 {approx = true} : vector<1x256xf32> -> vector<1x256xf32>
    %277 = math.tanh %270 : vector<1x256xf32>
    %278 = arith.select %27, %276, %277 : vector<1x256xi1>, vector<1x256xf32>
    %279 = vector.extract_strided_slice %278 {offsets = [0, 0], sizes = [1, 64], strides = [1, 1]} : vector<1x256xf32> to vector<1x64xf32>
    %280 = vector.extract_strided_slice %278 {offsets = [0, 64], sizes = [1, 64], strides = [1, 1]} : vector<1x256xf32> to vector<1x64xf32>
    %281 = vector.extract_strided_slice %278 {offsets = [0, 128], sizes = [1, 64], strides = [1, 1]} : vector<1x256xf32> to vector<1x64xf32>
    %282 = vector.extract_strided_slice %278 {offsets = [0, 192], sizes = [1, 64], strides = [1, 1]} : vector<1x256xf32> to vector<1x64xf32>
    %283 = arith.mulf %280, %262 : vector<1x64xf32>
    %284 = arith.mulf %279, %282 : vector<1x64xf32>
    %285 = arith.addf %283, %284 : vector<1x64xf32>
    %286 = math.tanh %285 : vector<1x64xf32>
    %287 = arith.mulf %281, %286 : vector<1x64xf32>
    %288 = vector.extract_strided_slice %238 {offsets = [5, 0], sizes = [1, 256], strides = [1, 1]} : vector<8x256xf32> to vector<1x256xf32>
    %289 = vector.extract_strided_slice %238 {offsets = [2, 0], sizes = [1, 256], strides = [1, 1]} : vector<8x256xf32> to vector<1x256xf32>
    %290 = arith.select %25, %288, %289 : vector<1x256xi1>, vector<1x256xf32>
    %291 = arith.truncf %287 : vector<1x64xf32> to vector<1x64xbf16>
    %cst_50 = arith.constant dense<0.000000e+00> : vector<1x256xf32>
    %292 = tpu.matmul %291, %239, %cst_50 {dimension_numbers = #tpu.dot_dimension_numbers<[1], [0], [0], [1], [0, 0, 1, 1], [], []>} : vector<1x64xbf16>, vector<64x256xbf16>, vector<1x256xf32> -> vector<1x256xf32>
    %293 = arith.addf %290, %292 : vector<1x256xf32>
    %cst_51 = arith.constant 0.000000e+00 : f32
    %294 = vector.broadcast %cst_51 : f32 to vector<1x256xf32>
    %295 = arith.subf %294, %293 : vector<1x256xf32>
    %296 = math.exp %295 : vector<1x256xf32>
    %cst_52 = arith.constant 1.000000e+00 : f32
    %297 = vector.broadcast %cst_52 : f32 to vector<1x256xf32>
    %298 = arith.addf %297, %296 : vector<1x256xf32>
    %299 = tpu.reciprocal %298 {approx = true} : vector<1x256xf32> -> vector<1x256xf32>
    %300 = math.tanh %293 : vector<1x256xf32>
    %301 = arith.select %27, %299, %300 : vector<1x256xi1>, vector<1x256xf32>
    %302 = vector.extract_strided_slice %301 {offsets = [0, 0], sizes = [1, 64], strides = [1, 1]} : vector<1x256xf32> to vector<1x64xf32>
    %303 = vector.extract_strided_slice %301 {offsets = [0, 64], sizes = [1, 64], strides = [1, 1]} : vector<1x256xf32> to vector<1x64xf32>
    %304 = vector.extract_strided_slice %301 {offsets = [0, 128], sizes = [1, 64], strides = [1, 1]} : vector<1x256xf32> to vector<1x64xf32>
    %305 = vector.extract_strided_slice %301 {offsets = [0, 192], sizes = [1, 64], strides = [1, 1]} : vector<1x256xf32> to vector<1x64xf32>
    %306 = arith.mulf %303, %285 : vector<1x64xf32>
    %307 = arith.mulf %302, %305 : vector<1x64xf32>
    %308 = arith.addf %306, %307 : vector<1x64xf32>
    %309 = math.tanh %308 : vector<1x64xf32>
    %310 = arith.mulf %304, %309 : vector<1x64xf32>
    %311 = vector.extract_strided_slice %238 {offsets = [4, 0], sizes = [1, 256], strides = [1, 1]} : vector<8x256xf32> to vector<1x256xf32>
    %312 = vector.extract_strided_slice %238 {offsets = [3, 0], sizes = [1, 256], strides = [1, 1]} : vector<8x256xf32> to vector<1x256xf32>
    %313 = arith.select %25, %311, %312 : vector<1x256xi1>, vector<1x256xf32>
    %314 = arith.truncf %310 : vector<1x64xf32> to vector<1x64xbf16>
    %cst_53 = arith.constant dense<0.000000e+00> : vector<1x256xf32>
    %315 = tpu.matmul %314, %239, %cst_53 {dimension_numbers = #tpu.dot_dimension_numbers<[1], [0], [0], [1], [0, 0, 1, 1], [], []>} : vector<1x64xbf16>, vector<64x256xbf16>, vector<1x256xf32> -> vector<1x256xf32>
    %316 = arith.addf %313, %315 : vector<1x256xf32>
    %cst_54 = arith.constant 0.000000e+00 : f32
    %317 = vector.broadcast %cst_54 : f32 to vector<1x256xf32>
    %318 = arith.subf %317, %316 : vector<1x256xf32>
    %319 = math.exp %318 : vector<1x256xf32>
    %cst_55 = arith.constant 1.000000e+00 : f32
    %320 = vector.broadcast %cst_55 : f32 to vector<1x256xf32>
    %321 = arith.addf %320, %319 : vector<1x256xf32>
    %322 = tpu.reciprocal %321 {approx = true} : vector<1x256xf32> -> vector<1x256xf32>
    %323 = math.tanh %316 : vector<1x256xf32>
    %324 = arith.select %27, %322, %323 : vector<1x256xi1>, vector<1x256xf32>
    %325 = vector.extract_strided_slice %324 {offsets = [0, 0], sizes = [1, 64], strides = [1, 1]} : vector<1x256xf32> to vector<1x64xf32>
    %326 = vector.extract_strided_slice %324 {offsets = [0, 64], sizes = [1, 64], strides = [1, 1]} : vector<1x256xf32> to vector<1x64xf32>
    %327 = vector.extract_strided_slice %324 {offsets = [0, 128], sizes = [1, 64], strides = [1, 1]} : vector<1x256xf32> to vector<1x64xf32>
    %328 = vector.extract_strided_slice %324 {offsets = [0, 192], sizes = [1, 64], strides = [1, 1]} : vector<1x256xf32> to vector<1x64xf32>
    %329 = arith.mulf %326, %308 : vector<1x64xf32>
    %330 = arith.mulf %325, %328 : vector<1x64xf32>
    %331 = arith.addf %329, %330 : vector<1x64xf32>
    %332 = math.tanh %331 : vector<1x64xf32>
    %333 = arith.mulf %327, %332 : vector<1x64xf32>
    %334 = vector.extract_strided_slice %238 {offsets = [3, 0], sizes = [1, 256], strides = [1, 1]} : vector<8x256xf32> to vector<1x256xf32>
    %335 = vector.extract_strided_slice %238 {offsets = [4, 0], sizes = [1, 256], strides = [1, 1]} : vector<8x256xf32> to vector<1x256xf32>
    %336 = arith.select %25, %334, %335 : vector<1x256xi1>, vector<1x256xf32>
    %337 = arith.truncf %333 : vector<1x64xf32> to vector<1x64xbf16>
    %cst_56 = arith.constant dense<0.000000e+00> : vector<1x256xf32>
    %338 = tpu.matmul %337, %239, %cst_56 {dimension_numbers = #tpu.dot_dimension_numbers<[1], [0], [0], [1], [0, 0, 1, 1], [], []>} : vector<1x64xbf16>, vector<64x256xbf16>, vector<1x256xf32> -> vector<1x256xf32>
    %339 = arith.addf %336, %338 : vector<1x256xf32>
    %cst_57 = arith.constant 0.000000e+00 : f32
    %340 = vector.broadcast %cst_57 : f32 to vector<1x256xf32>
    %341 = arith.subf %340, %339 : vector<1x256xf32>
    %342 = math.exp %341 : vector<1x256xf32>
    %cst_58 = arith.constant 1.000000e+00 : f32
    %343 = vector.broadcast %cst_58 : f32 to vector<1x256xf32>
    %344 = arith.addf %343, %342 : vector<1x256xf32>
    %345 = tpu.reciprocal %344 {approx = true} : vector<1x256xf32> -> vector<1x256xf32>
    %346 = math.tanh %339 : vector<1x256xf32>
    %347 = arith.select %27, %345, %346 : vector<1x256xi1>, vector<1x256xf32>
    %348 = vector.extract_strided_slice %347 {offsets = [0, 0], sizes = [1, 64], strides = [1, 1]} : vector<1x256xf32> to vector<1x64xf32>
    %349 = vector.extract_strided_slice %347 {offsets = [0, 64], sizes = [1, 64], strides = [1, 1]} : vector<1x256xf32> to vector<1x64xf32>
    %350 = vector.extract_strided_slice %347 {offsets = [0, 128], sizes = [1, 64], strides = [1, 1]} : vector<1x256xf32> to vector<1x64xf32>
    %351 = vector.extract_strided_slice %347 {offsets = [0, 192], sizes = [1, 64], strides = [1, 1]} : vector<1x256xf32> to vector<1x64xf32>
    %352 = arith.mulf %349, %331 : vector<1x64xf32>
    %353 = arith.mulf %348, %351 : vector<1x64xf32>
    %354 = arith.addf %352, %353 : vector<1x64xf32>
    %355 = math.tanh %354 : vector<1x64xf32>
    %356 = arith.mulf %350, %355 : vector<1x64xf32>
    %357 = vector.extract_strided_slice %238 {offsets = [2, 0], sizes = [1, 256], strides = [1, 1]} : vector<8x256xf32> to vector<1x256xf32>
    %358 = vector.extract_strided_slice %238 {offsets = [5, 0], sizes = [1, 256], strides = [1, 1]} : vector<8x256xf32> to vector<1x256xf32>
    %359 = arith.select %25, %357, %358 : vector<1x256xi1>, vector<1x256xf32>
    %360 = arith.truncf %356 : vector<1x64xf32> to vector<1x64xbf16>
    %cst_59 = arith.constant dense<0.000000e+00> : vector<1x256xf32>
    %361 = tpu.matmul %360, %239, %cst_59 {dimension_numbers = #tpu.dot_dimension_numbers<[1], [0], [0], [1], [0, 0, 1, 1], [], []>} : vector<1x64xbf16>, vector<64x256xbf16>, vector<1x256xf32> -> vector<1x256xf32>
    %362 = arith.addf %359, %361 : vector<1x256xf32>
    %cst_60 = arith.constant 0.000000e+00 : f32
    %363 = vector.broadcast %cst_60 : f32 to vector<1x256xf32>
    %364 = arith.subf %363, %362 : vector<1x256xf32>
    %365 = math.exp %364 : vector<1x256xf32>
    %cst_61 = arith.constant 1.000000e+00 : f32
    %366 = vector.broadcast %cst_61 : f32 to vector<1x256xf32>
    %367 = arith.addf %366, %365 : vector<1x256xf32>
    %368 = tpu.reciprocal %367 {approx = true} : vector<1x256xf32> -> vector<1x256xf32>
    %369 = math.tanh %362 : vector<1x256xf32>
    %370 = arith.select %27, %368, %369 : vector<1x256xi1>, vector<1x256xf32>
    %371 = vector.extract_strided_slice %370 {offsets = [0, 0], sizes = [1, 64], strides = [1, 1]} : vector<1x256xf32> to vector<1x64xf32>
    %372 = vector.extract_strided_slice %370 {offsets = [0, 64], sizes = [1, 64], strides = [1, 1]} : vector<1x256xf32> to vector<1x64xf32>
    %373 = vector.extract_strided_slice %370 {offsets = [0, 128], sizes = [1, 64], strides = [1, 1]} : vector<1x256xf32> to vector<1x64xf32>
    %374 = vector.extract_strided_slice %370 {offsets = [0, 192], sizes = [1, 64], strides = [1, 1]} : vector<1x256xf32> to vector<1x64xf32>
    %375 = arith.mulf %372, %354 : vector<1x64xf32>
    %376 = arith.mulf %371, %374 : vector<1x64xf32>
    %377 = arith.addf %375, %376 : vector<1x64xf32>
    %378 = math.tanh %377 : vector<1x64xf32>
    %379 = arith.mulf %373, %378 : vector<1x64xf32>
    %380 = vector.extract_strided_slice %238 {offsets = [1, 0], sizes = [1, 256], strides = [1, 1]} : vector<8x256xf32> to vector<1x256xf32>
    %381 = vector.extract_strided_slice %238 {offsets = [6, 0], sizes = [1, 256], strides = [1, 1]} : vector<8x256xf32> to vector<1x256xf32>
    %382 = arith.select %25, %380, %381 : vector<1x256xi1>, vector<1x256xf32>
    %383 = arith.truncf %379 : vector<1x64xf32> to vector<1x64xbf16>
    %cst_62 = arith.constant dense<0.000000e+00> : vector<1x256xf32>
    %384 = tpu.matmul %383, %239, %cst_62 {dimension_numbers = #tpu.dot_dimension_numbers<[1], [0], [0], [1], [0, 0, 1, 1], [], []>} : vector<1x64xbf16>, vector<64x256xbf16>, vector<1x256xf32> -> vector<1x256xf32>
    %385 = arith.addf %382, %384 : vector<1x256xf32>
    %cst_63 = arith.constant 0.000000e+00 : f32
    %386 = vector.broadcast %cst_63 : f32 to vector<1x256xf32>
    %387 = arith.subf %386, %385 : vector<1x256xf32>
    %388 = math.exp %387 : vector<1x256xf32>
    %cst_64 = arith.constant 1.000000e+00 : f32
    %389 = vector.broadcast %cst_64 : f32 to vector<1x256xf32>
    %390 = arith.addf %389, %388 : vector<1x256xf32>
    %391 = tpu.reciprocal %390 {approx = true} : vector<1x256xf32> -> vector<1x256xf32>
    %392 = math.tanh %385 : vector<1x256xf32>
    %393 = arith.select %27, %391, %392 : vector<1x256xi1>, vector<1x256xf32>
    %394 = vector.extract_strided_slice %393 {offsets = [0, 0], sizes = [1, 64], strides = [1, 1]} : vector<1x256xf32> to vector<1x64xf32>
    %395 = vector.extract_strided_slice %393 {offsets = [0, 64], sizes = [1, 64], strides = [1, 1]} : vector<1x256xf32> to vector<1x64xf32>
    %396 = vector.extract_strided_slice %393 {offsets = [0, 128], sizes = [1, 64], strides = [1, 1]} : vector<1x256xf32> to vector<1x64xf32>
    %397 = vector.extract_strided_slice %393 {offsets = [0, 192], sizes = [1, 64], strides = [1, 1]} : vector<1x256xf32> to vector<1x64xf32>
    %398 = arith.mulf %395, %377 : vector<1x64xf32>
    %399 = arith.mulf %394, %397 : vector<1x64xf32>
    %400 = arith.addf %398, %399 : vector<1x64xf32>
    %401 = math.tanh %400 : vector<1x64xf32>
    %402 = arith.mulf %396, %401 : vector<1x64xf32>
    %403 = vector.extract_strided_slice %238 {offsets = [0, 0], sizes = [1, 256], strides = [1, 1]} : vector<8x256xf32> to vector<1x256xf32>
    %404 = vector.extract_strided_slice %238 {offsets = [7, 0], sizes = [1, 256], strides = [1, 1]} : vector<8x256xf32> to vector<1x256xf32>
    %405 = arith.select %25, %403, %404 : vector<1x256xi1>, vector<1x256xf32>
    %406 = arith.truncf %402 : vector<1x64xf32> to vector<1x64xbf16>
    %cst_65 = arith.constant dense<0.000000e+00> : vector<1x256xf32>
    %407 = tpu.matmul %406, %239, %cst_65 {dimension_numbers = #tpu.dot_dimension_numbers<[1], [0], [0], [1], [0, 0, 1, 1], [], []>} : vector<1x64xbf16>, vector<64x256xbf16>, vector<1x256xf32> -> vector<1x256xf32>
    %408 = arith.addf %405, %407 : vector<1x256xf32>
    %cst_66 = arith.constant 0.000000e+00 : f32
    %409 = vector.broadcast %cst_66 : f32 to vector<1x256xf32>
    %410 = arith.subf %409, %408 : vector<1x256xf32>
    %411 = math.exp %410 : vector<1x256xf32>
    %cst_67 = arith.constant 1.000000e+00 : f32
    %412 = vector.broadcast %cst_67 : f32 to vector<1x256xf32>
    %413 = arith.addf %412, %411 : vector<1x256xf32>
    %414 = tpu.reciprocal %413 {approx = true} : vector<1x256xf32> -> vector<1x256xf32>
    %415 = math.tanh %408 : vector<1x256xf32>
    %416 = arith.select %27, %414, %415 : vector<1x256xi1>, vector<1x256xf32>
    %417 = vector.extract_strided_slice %416 {offsets = [0, 0], sizes = [1, 64], strides = [1, 1]} : vector<1x256xf32> to vector<1x64xf32>
    %418 = vector.extract_strided_slice %416 {offsets = [0, 64], sizes = [1, 64], strides = [1, 1]} : vector<1x256xf32> to vector<1x64xf32>
    %419 = vector.extract_strided_slice %416 {offsets = [0, 128], sizes = [1, 64], strides = [1, 1]} : vector<1x256xf32> to vector<1x64xf32>
    %420 = vector.extract_strided_slice %416 {offsets = [0, 192], sizes = [1, 64], strides = [1, 1]} : vector<1x256xf32> to vector<1x64xf32>
    %421 = arith.mulf %418, %400 : vector<1x64xf32>
    %422 = arith.mulf %417, %420 : vector<1x64xf32>
    %423 = arith.addf %421, %422 : vector<1x64xf32>
    %424 = math.tanh %423 : vector<1x64xf32>
    %425 = arith.mulf %419, %424 : vector<1x64xf32>
    %426 = arith.select %30, %264, %425 : vector<1x64xi1>, vector<1x64xf32>
    %427 = arith.select %30, %287, %402 : vector<1x64xi1>, vector<1x64xf32>
    %428 = arith.select %30, %310, %379 : vector<1x64xi1>, vector<1x64xf32>
    %429 = arith.select %30, %333, %356 : vector<1x64xi1>, vector<1x64xf32>
    %430 = arith.select %30, %356, %333 : vector<1x64xi1>, vector<1x64xf32>
    %431 = arith.select %30, %379, %310 : vector<1x64xi1>, vector<1x64xf32>
    %432 = arith.select %30, %402, %287 : vector<1x64xi1>, vector<1x64xf32>
    %433 = arith.select %30, %425, %264 : vector<1x64xi1>, vector<1x64xf32>
    %434 = tpu.concatenate %426, %427, %428, %429, %430, %431, %432, %433 in 0 : vector<1x64xf32>, vector<1x64xf32>, vector<1x64xf32>, vector<1x64xf32>, vector<1x64xf32>, vector<1x64xf32>, vector<1x64xf32>, vector<1x64xf32> -> vector<8x64xf32>
    %435 = arith.truncf %434 : vector<8x64xf32> to vector<8x64xbf16>
    %c0_68 = arith.constant 0 : index
    %c0_69 = arith.constant 0 : index
    %436 = vector.load %arg8[%c0_68, %c0_69] : memref<64x128xbf16, #tpu.memory_space<vmem>>, vector<64x128xbf16>
    %cst_70 = arith.constant dense<0.000000e+00> : vector<8x128xf32>
    %437 = tpu.matmul %435, %436, %cst_70 {dimension_numbers = #tpu.dot_dimension_numbers<[1], [0], [0], [1], [0, 0, 1, 1], [], []>} : vector<8x64xbf16>, vector<64x128xbf16>, vector<8x128xf32> -> vector<8x128xf32>
    %438 = vector.extract_strided_slice %437 {offsets = [0, 0], sizes = [8, 64], strides = [1, 1]} : vector<8x128xf32> to vector<8x64xf32>
    %439 = vector.extract_strided_slice %437 {offsets = [0, 64], sizes = [8, 64], strides = [1, 1]} : vector<8x128xf32> to vector<8x64xf32>
    %440 = vector.shape_cast %438 : vector<8x64xf32> to vector<8x1x64xf32>
    %441 = vector.shape_cast %439 : vector<8x64xf32> to vector<1x8x64xf32>
    %442 = vector.broadcast %440 : vector<8x1x64xf32> to vector<8x8x64xf32>
    %443 = vector.broadcast %441 : vector<1x8x64xf32> to vector<8x8x64xf32>
    %444 = arith.addf %442, %443 : vector<8x8x64xf32>
    %c0_71 = arith.constant 0 : index
    %c0_72 = arith.constant 0 : index
    %445 = vector.load %arg9[%c0_71, %c0_72] : memref<1x64xf32, #tpu.memory_space<vmem>>, vector<1x64xf32>
    %446 = vector.shape_cast %445 : vector<1x64xf32> to vector<1x1x64xf32>
    %447 = vector.broadcast %446 : vector<1x1x64xf32> to vector<8x8x64xf32>
    %448 = arith.addf %444, %447 : vector<8x8x64xf32>
    %cst_73 = arith.constant 0.000000e+00 : f32
    %449 = vector.broadcast %cst_73 : f32 to vector<8x8x64xf32>
    %450 = arith.maximumf %448, %449 : vector<8x8x64xf32>
    %c0_74 = arith.constant 0 : index
    %c0_75 = arith.constant 0 : index
    %451 = vector.load %arg10[%c0_74, %c0_75] : memref<1x64xf32, #tpu.memory_space<vmem>>, vector<1x64xf32>
    %452 = vector.shape_cast %451 : vector<1x64xf32> to vector<1x1x64xf32>
    %453 = vector.broadcast %452 : vector<1x1x64xf32> to vector<8x8x64xf32>
    %454 = arith.mulf %450, %453 : vector<8x8x64xf32>
    %cst_76 = arith.constant dense<0.000000e+00> : vector<8x8xf32>
    %455 = vector.multi_reduction <add>, %454, %cst_76 [2] : vector<8x8x64xf32> to vector<8x8xf32>
    %c0_77 = arith.constant 0 : index
    %456 = memref.load %arg11[%c0_77] : memref<1xf32, #tpu.memory_space<smem>>
    %457 = vector.broadcast %456 : f32 to vector<8x8xf32>
    %458 = arith.addf %455, %457 : vector<8x8xf32>
    %459 = tpu.iota {dimensions = array<i32: 0>} : vector<8x8xi32>
    %460 = tpu.iota {dimensions = array<i32: 1>} : vector<8x8xi32>
    %461 = arith.cmpi eq, %459, %460 : vector<8x8xi32>
    %cst_78 = arith.constant 0.000000e+00 : f32
    %462 = vector.broadcast %cst_78 : f32 to vector<8x8xf32>
    %463 = arith.select %461, %462, %458 : vector<8x8xi1>, vector<8x8xf32>
    %c0_79 = arith.constant 0 : index
    %c0_80 = arith.constant 0 : index
    %464 = vector.load %arg12[%c0_79, %c0_80] : memref<8x8xf32, #tpu.memory_space<vmem>>, vector<8x8xf32>
    tpu.vector_store %arg12[%c0_79, %c0_80], %463 {strides = array<i32>} : memref<8x8xf32, #tpu.memory_space<vmem>>, vector<8x8xf32>,
    return
  }
  func.func @transform_0(%arg0: i32) -> (i32, i32) {
    %c0_i32 = arith.constant 0 : i32
    %c0_i32_0 = arith.constant 0 : i32
    %c0_i32_1 = arith.constant 0 : i32
    return %c0_i32, %c0_i32_0 : i32, i32
  }
  func.func @transform_1(%arg0: i32) -> (i32, i32) {
    %c0_i32 = arith.constant 0 : i32
    %c0_i32_0 = arith.constant 0 : i32
    %c0_i32_1 = arith.constant 0 : i32
    return %c0_i32, %c0_i32_0 : i32, i32
  }
  func.func @transform_2(%arg0: i32) -> (i32, i32) {
    %c0_i32 = arith.constant 0 : i32
    %c0_i32_0 = arith.constant 0 : i32
    %c0_i32_1 = arith.constant 0 : i32
    return %c0_i32, %c0_i32_0 : i32, i32
  }
  func.func @transform_3(%arg0: i32) -> (i32, i32) {
    %c0_i32 = arith.constant 0 : i32
    %c0_i32_0 = arith.constant 0 : i32
    %c0_i32_1 = arith.constant 0 : i32
    return %c0_i32, %c0_i32_0 : i32, i32
  }
  func.func @transform_4(%arg0: i32) -> (i32, i32) {
    %c0_i32 = arith.constant 0 : i32
    %c0_i32_0 = arith.constant 0 : i32
    %c0_i32_1 = arith.constant 0 : i32
    return %c0_i32, %c0_i32_0 : i32, i32
  }
  func.func @transform_5(%arg0: i32) -> (i32, i32) {
    %c0_i32 = arith.constant 0 : i32
    %c0_i32_0 = arith.constant 0 : i32
    %c0_i32_1 = arith.constant 0 : i32
    return %c0_i32, %c0_i32_0 : i32, i32
  }
  func.func @transform_6(%arg0: i32) -> (i32, i32) {
    %c0_i32 = arith.constant 0 : i32
    %c0_i32_0 = arith.constant 0 : i32
    %c0_i32_1 = arith.constant 0 : i32
    return %c0_i32, %c0_i32_0 : i32, i32
  }
  func.func @transform_7(%arg0: i32) -> (i32, i32) {
    %c0_i32 = arith.constant 0 : i32
    %c0_i32_0 = arith.constant 0 : i32
    %c0_i32_1 = arith.constant 0 : i32
    return %c0_i32, %c0_i32_0 : i32, i32
  }
  func.func @transform_8(%arg0: i32) -> (i32, i32) {
    %c0_i32 = arith.constant 0 : i32
    %c0_i32_0 = arith.constant 0 : i32
    %c0_i32_1 = arith.constant 0 : i32
    return %c0_i32, %c0_i32_0 : i32, i32
  }
  func.func @transform_9(%arg0: i32) -> (i32, i32) {
    %c0_i32 = arith.constant 0 : i32
    %c0_i32_0 = arith.constant 0 : i32
    %c0_i32_1 = arith.constant 0 : i32
    return %c0_i32, %c0_i32_0 : i32, i32
  }
  func.func @transform_10(%arg0: i32) -> i32 {
    %c0_i32 = arith.constant 0 : i32
    %c0_i32_0 = arith.constant 0 : i32
    return %c0_i32 : i32
  }
  func.func @transform_11(%arg0: i32) -> (i32, i32) {
    %c0_i32 = arith.constant 0 : i32
    %c0_i32_0 = arith.constant 0 : i32
    %c0_i32_1 = arith.constant 0 : i32
    return %c0_i32, %c0_i32_0 : i32, i32
  }
}

</mosaic_0001>

<bundles_post_ra>
// kernel: forward.1
= control target key start
LH: loop header
LB: loop body
LE: loop exit
PB: predicated region body
PF: predicated region fallthrough
CT: control target
= control target key end

     0   :  { %v2712_v2 = vmov 0   ;;  %s3542_s0 = inlined_call_operand.vmem [shape: bf16[8,128], index: 0, kind: input, shape index: {}]   ;;  %s3543_s1 = inlined_call_operand.vmem [shape: bf16[128,256], index: 1, kind: input, shape index: {}]   ;;  %s3544_s2 = inlined_call_operand.vmem [shape: f32[1,256], index: 2, kind: input, shape index: {}]   ;;  %s3545_s3 = inlined_call_operand.vmem [shape: bf16[64,256], index: 3, kind: input, shape index: {}]   ;;  %s3546_s4 = inlined_call_operand.vmem [shape: bf16[64,256], index: 4, kind: input, shape index: {}]   ;;  %s3547_s5 = inlined_call_operand.vmem [shape: f32[1,256], index: 5, kind: input, shape index: {}]   ;;  %s3548_s6 = inlined_call_operand.vmem [shape: bf16[64,256], index: 6, kind: input, shape index: {}]   ;;  %s3549_s7 = inlined_call_operand.vmem [shape: bf16[64,128], index: 7, kind: input, shape index: {}]   ;;  %s3550_s8 = inlined_call_operand.vmem [shape: f32[1,64], index: 8, kind: input, shape index: {}]   ;;  %s3551_s9 = inlined_call_operand.vmem [shape: f32[1,64], index: 9, kind: input, shape index: {}]   ;;  %s3552_s10 = inlined_call_operand.<no memory space> [shape: f32[1], index: 10, kind: input, shape index: {}]   ;;  %s3553_s11 = inlined_call_operand.hbm [shape: f32[8,8], index: 11, kind: output, shape index: {}]  }
   0x1   :  { %v2432_v0 = vld [vmem:[%s3543_s1 + $0x4] ss:$8 sps:$4 sm:$0xff]   ;;  %v2434_v1 = vld [vmem:[%s3543_s1] ss:$8 sps:$4 sm:$0xff]   ;;  %216 = vmatprep.mubr.bf16.mxu0 %v2712_v2  ;;  %317 = vmatprep.mubr.bf16.mxu1 %v2712_v2  ;;  %v2435_v3 = vld [vmem:[%s3543_s1 + $0x14] ss:$8 sps:$4 sm:$0xff]  }
   0x2   :  { %184 = vmatprep.subr.bf16.mxu0 %v2432_v0  ;;  %v2437_v4 = vld [vmem:[%s3543_s1 + $0x10] ss:$8 sps:$4 sm:$0xff]   ;;  %v2438_v5 = vld [vmem:[%s3543_s1 + $0x24] ss:$8 sps:$4 sm:$0xff]   ;;  %v2440_v6 = vld [vmem:[%s3543_s1 + $0x20] ss:$8 sps:$4 sm:$0xff]  }
   0x3   :  { %185 = vmatpush1.bf16.msra.mxu0 %v2434_v1  ;;  %v2801_v7 = vld [vmem:[%s3545_s3 + $0x4] ss:$8 sps:$4 sm:$0xff]   ;;  %v2806_v8 = vld [vmem:[%s3545_s3] ss:$8 sps:$4 sm:$0xff]   ;;  %v2441_v9 = vld [vmem:[%s3543_s1 + $0x34] ss:$8 sps:$4 sm:$0xff]  }
   0x4   :  { %186 = vmatprep.subr.bf16.mxu0 %v2435_v3  ;;  %285 = vmatprep.subr.bf16.mxu1 %v2801_v7  ;;  %v2815_v10 = vld [vmem:[%s3545_s3 + $0x14] ss:$8 sps:$4 sm:$0xff]   ;;  %v2821_v11 = vld [vmem:[%s3545_s3 + $0x10] ss:$8 sps:$4 sm:$0xff]   ;;  %v2444_v13 = vld [vmem:[%s3543_s1 + $0x44] ss:$8 sps:$4 sm:$0xff]  }
   0x5   :  { %286 = vmatpush1.bf16.msra.mxu1 %v2806_v8  ;;  %v2443_v12 = vld [vmem:[%s3543_s1 + $0x30] ss:$8 sps:$4 sm:$0xff]   ;;  %v2833_v14 = vld [vmem:[%s3545_s3 + $0x24] ss:$8 sps:$4 sm:$0xff]   ;;  %v2839_v15 = vld [vmem:[%s3545_s3 + $0x20] ss:$8 sps:$4 sm:$0xff]  }
   0x6   :  { %287 = vmatprep.subr.bf16.mxu1 %v2815_v10  ;;  %v2448_v16 = vld [vmem:[%s3543_s1 + $0x40] ss:$8 sps:$4 sm:$0xff]   ;;  %v2848_v17 = vld [vmem:[%s3545_s3 + $0x34] ss:$8 sps:$4 sm:$0xff]   ;;  %v2856_v19 = vld [vmem:[%s3545_s3 + $0x30] ss:$8 sps:$4 sm:$0xff]  }
   0x7   :  { %187 = vmatpush1.bf16.msra.mxu0 %v2437_v4  ;;  %v2450_v18 = vld [vmem:[%s3543_s1 + $0x54] ss:$8 sps:$4 sm:$0xff]   ;;  %v2454_v20 = vld [vmem:[%s3543_s1 + $0x50] ss:$8 sps:$4 sm:$0xff]   ;;  %v2456_v21 = vld [vmem:[%s3543_s1 + $0x64] ss:$8 sps:$4 sm:$0xff]  }
   0x8   :  { %188 = vmatprep.subr.bf16.mxu0 %v2438_v5  ;;  %v2460_v22 = vld [vmem:[%s3543_s1 + $0x60] ss:$8 sps:$4 sm:$0xff]   ;;  %v2462_v23 = vld [vmem:[%s3543_s1 + $0x74] ss:$8 sps:$4 sm:$0xff]  }
   0x9   :  { %288 = vmatpush1.bf16.msra.mxu1 %v2821_v11 }
   0xa   :  { %289 = vmatprep.subr.bf16.mxu1 %v2833_v14 }
   0xb   :  { %189 = vmatpush1.bf16.msra.mxu0 %v2440_v6 }
   0xc   :  { %190 = vmatprep.subr.bf16.mxu0 %v2441_v9 }
   0xd   :  { %290 = vmatpush1.bf16.msra.mxu1 %v2839_v15 }
   0xe   :  { %291 = vmatprep.subr.bf16.mxu1 %v2848_v17 }
   0xf   :  { %191 = vmatpush1.bf16.msra.mxu0 %v2443_v12 }
  0x10   :  { %192 = vmatprep.subr.bf16.mxu0 %v2444_v13 }
  0x11   :  { %292 = vmatpush1.bf16.msra.mxu1 %v2856_v19 }
  0x12   :  { %379 = vmatprep.subr.bf16.mxu1 %v2801_v7 }
  0x13   :  { %193 = vmatpush1.bf16.msra.mxu0 %v2448_v16 }
  0x14   :  { %194 = vmatprep.subr.bf16.mxu0 %v2450_v18 }
  0x17   :  { %195 = vmatpush1.bf16.msra.mxu0 %v2454_v20 }
  0x18   :  { %196 = vmatprep.subr.bf16.mxu0 %v2456_v21 }
  0x19   :  { %17 = vsyncpa [#allocation4], 0  ;;  %318 = vmatmul.mubr.bf16.vlgmr.msra.gmra.mrb[0].mxu1 %v2712_v2  ;;  %v2466_v24 = vld [vmem:[%s3543_s1 + $0x70] ss:$8 sps:$4 sm:$0xff]   ;;  %v75_v25 = vld [vmem:[%s3542_s0] sm:$0xf]  ;;  %v41_v26 = vlaneseq }
  0x1a   :  { %380 = vmatpush1.bf16.msra.mxu1 %v2806_v8  ;;  %411 = vmatprep.mubr.bf16.mxu1 %v2712_v2  ;;  %v92_v35 = vld [vmem:[%s3544_s2] sm:$0x3]  ;;  %s2713_s2 = smov 64   ;;  %vm281_vm10 = vcmask 523264   ;;  %vm1063_vm12 = vcmask 1040384   ;;  %vm1065_vm13 = vcmask 1041408  }
  0x1b   :  { %197 = vmatpush1.bf16.msra.mxu0 %v2460_v22  ;;  %381 = vmatprep.subr.bf16.mxu1 %v2815_v10  ;;  %v2900_v27 = vand.u32 127, %v41_v26  ;;  %v2902_v28 = vshrl.u32 %v41_v26, 7  ;;  %vm1067_vm14 = vcmask 1042432   ;;  %vm1069_vm15 = vcmask 1043456  }
  0x1c   :  { %198 = vmatprep.subr.bf16.mxu0 %v2462_v23 }
  0x1d   :  { %v2905_v31 = vadd.s32 128, %v2900_v27  ;;  %v100_v33 = vsub.s32 1, %v2902_v28  ;;  %v2935_v54 = vsub.s32 0, %v2902_v28  ;;  %vm44_vm5 = vcmp.ge.s32.totalorder %v2900_v27, 32 }
  0x1e   :  { %382 = vmatpush1.bf16.msra.mxu1 %v2821_v11  ;;  %vm46_vm6 = vcmp.lt.s32.totalorder %v2900_v27, 64  ;;  %vm50_vm8 = vcmp.ge.s32.totalorder %v2900_v27, 96  ;;  %vm74_vm11 = vcmp.lt.s32.totalorder %v2900_v27, 32 }
  0x1f   :  { %199 = vmatpush1.bf16.msra.mxu0 %v2466_v24  ;;  %383 = vmatprep.subr.bf16.mxu1 %v2833_v14  ;;  %vm59_vm0 = vcmp.ge.s32.totalorder %v2905_v31, 160  ;;  %vm61_vm1 = vcmp.lt.s32.totalorder %v2905_v31, 192  ;;  %v101_v36 = vrot.slane %v92_v35, %v100_v33  ;;  %vm67_vm3 = vcmp.ge.s32.totalorder %v2905_v31, 224  ;;  %vm48_vm7 = vmand %vm44_vm5, %vm46_vm6 }
  0x20   :  { %474 = vmatprep.subr.bf16.mxu0 %v2801_v7  ;;  %vm63_vm2 = vmand %vm59_vm0, %vm61_vm1  ;;  %v97_v55 = vrot.slane %v92_v35, %v2935_v54  ;;  %vm1071_vm0 = vcmask 1044480   ;;  %vm2317_vm5 = vcmask 1042434   ;;  %vm2319_vm6 = vcmask 1043459  }
  0x21   :  { %vm2920_vm4 = vmor %vm63_vm2, %vm67_vm3  ;;  %vm1073_vm2 = vcmask 1045504   ;;  %vm1075_vm3 = vcmask 1046528  }
  0x22   :  { %217 = vmatmul.mubr.bf16.vlgmr.msra.gmra.mrb[0].mxu0 %v75_v25  ;;  %384 = vmatpush1.bf16.msra.mxu1 %v2839_v15  ;;  %vm2944_vm9 = vmor %vm48_vm7, %vm50_vm8  ;;  %vm2321_vm7 = vcmask 1044484   ;;  %vm2323_vm8 = vcmask 1045509  }
  0x23   :  { %385 = vmatprep.subr.bf16.mxu1 %v2848_v17  ;;  %475 = vmatpush1.bf16.msra.mxu0 %v2806_v8 }
  0x24   :  { %476 = vmatprep.subr.bf16.mxu0 %v2815_v10  ;;  %506 = vmatprep.mubr.bf16.mxu0 %v2712_v2 }
  0x26   :  { %386 = vmatpush1.bf16.msra.mxu1 %v2856_v19 }
  0x27   :  { %477 = vmatpush1.bf16.msra.mxu0 %v2821_v11  ;;  %571 = vmatprep.subr.bf16.mxu1 %v2801_v7 }
  0x28   :  { %478 = vmatprep.subr.bf16.mxu0 %v2833_v14 }
  0x2b   :  { %479 = vmatpush1.bf16.msra.mxu0 %v2839_v15 }
  0x2c   :  { %480 = vmatprep.subr.bf16.mxu0 %v2848_v17 }
  0x2f   :  { %481 = vmatpush1.bf16.msra.mxu0 %v2856_v19 }
  0x30   :  { %660 = vmatprep.subr.bf16.mxu0 %v2801_v7 }
  0xec   :  { %v319_v29 = vpop.f32.mrb[0].mxu1 }
  0xed   :  { %v321_v30 = vpop.f32.mrb[1].mxu1  ;;  %v328_v59 = vrot.slane %v319_v29, 1 }
  0xee   :  { %v323_v32 = vpop.f32.mrb[2].mxu1  ;;  %v329_v42 = vrot.slane %v321_v30, 1 }
  0xef   :  { %v324_v34 = vpop.f32.mrb[3].mxu1 }
  0xf5   :  { %v218_v37 = vpop.f32.mrb[0].mxu0 }
  0xf6   :  { %v220_v38 = vpop.f32.mrb[1].mxu0  ;;  %v2940_v56 = vadd.f32 %v218_v37, %v97_v55 }
  0xf7   :  { %v2918_v39 = vadd.f32 %v220_v38, %v101_v36  ;;  %v222_v40 = vpop.f32.mrb[2].mxu0 }
  0xf8   :  { %v223_v43 = vpop.f32.mrb[3].mxu0  ;;  %v235_v57 = vrot.slane %v2940_v56, 1 }
  0xf9   :  { %v236_v44 = vrot.slane %v2918_v39, 1  ;;  %v366_v23 = vrot.slane %v2918_v39, 3 }
  0xfa   :  { %v2951_v60 = vsel %vm2944_vm9, %v2940_v56, %v235_v57 }
  0xfb   :  { %v2928_v45 = vsel %vm2920_vm4, %v2918_v39, %v236_v44  ;;  %v332_v61 = vadd.f32 %v328_v59, %v2951_v60  ;;  %v2974_v30 = vsel %vm2920_vm4, %v2918_v39, %v366_v23  ;;  %v365_v44 = vrot.slane %v2940_v56, 3 }
  0xfc   :  { %v333_v46 = vadd.f32 %v329_v42, %v2928_v45 }
  0xfd   :  { %v334_v62 = vsub.f32 0.0, %v332_v61 }
  0xfe   :  { %v335_v47 = vsub.f32 0.0, %v333_v46 }
  0xff   :  { %v336_v63 = vmul.f32 1.442695, %v334_v62 }
 0x100   :  { %v338_v48 = vmul.f32 1.442695, %v335_v47  ;;  %v2984_v47 = vsel %vm2944_vm9, %v2940_v56, %v365_v44 }
 0x102   :  { %2496 = vpow2.f32 %v338_v48 }
 0x103   :  { %2498 = vtanh.f32 %v333_v46 }
 0x10c   :  { %v2497_v49 = vpop.eup %2496 }
 0x10d   :  { %v341_v50 = vadd.f32 1.0, %v2497_v49  ;;  %v2499_v51 = vpop.eup %2498 }
 0x10f   :  { %2500 = vrcp.f32 %v341_v50 }
 0x110   :  { %2502 = vpow2.f32 %v336_v63 }
 0x119   :  { %v2501_v52 = vpop.eup %2500 }
 0x11a   :  { %v347_v53 = vsel %vm61_vm1, %v2501_v52, %v2499_v51  ;;  %v2503_v0 = vpop.eup %2502 }
 0x11b   :  { %350 = vrot.lane.b32.xlu0 %v347_v53, %s2713_s2  ;;  %v340_v1 = vadd.f32 1.0, %v2503_v0 }
 0x11d   :  { %2504 = vrcp.f32 %v340_v1 }
 0x127   :  { %v2505_v3 = vpop.eup %2504 }
 0x128   :  { %v348_v6 = vmul.f32 0.0, %v2505_v3 }
 0x18d   :  { %v351_v4 = vpop.permute.xlu0 %350 }
 0x18e   :  { %v353_v5 = vmul.f32 %v2505_v3, %v351_v4 }
 0x190   :  { %355 = vrot.lane.b32.xlu0 %v353_v5, %s2713_s2 }
 0x202   :  { %v356_v9 = vpop.permute.xlu0 %355 }
 0x203   :  { %v358_v12 = vadd.f32 %v356_v9, %v348_v6  ;;  %v463_v6 = vrot.slane %v2918_v39, 5 }
 0x205   :  { %2506 = vtanh.f32 %v358_v12  ;;  %v443_v59 = vrot.slane %v358_v12, 1 }
 0x20f   :  { %v2507_v13 = vpop.eup %2506 }
 0x210   :  { %361 = vrot.lane.b32.xlu1 %v2507_v13, %s2713_s2 }
 0x282   :  { %v362_v16 = vpop.permute.xlu1 %361 }
 0x283   :  { %v2956_v18 = vmul.f32 %v362_v16, %v347_v53 }
 0x285   :  { %v371_v20 = vpack.c.bf16 %v2956_v18, %v2956_v18 }
 0x287   :  { %v373_v21 = vshrl.u32 %v371_v20, 16  ;;  %v3007_v20 = vsel %vm2920_vm4, %v2918_v39, %v463_v6 }
 0x289   :  { %v375_v22 = vrot.slane %v373_v21, 3 }
 0x28b   :  { %2371 = vmatmul.mubr.msk.bf16.vlgmr.msra.gmra.mrb[4].mxu1 %vm281_vm10, %v375_v22 }
 0x28c   :  { %572 = vmatpush1.bf16.msra.mxu1 %v2806_v8  ;;  %603 = vmatprep.mubr.bf16.mxu1 %v2712_v2 }
 0x28d   :  { %573 = vmatprep.subr.bf16.mxu1 %v2815_v10 }
 0x290   :  { %574 = vmatpush1.bf16.msra.mxu1 %v2821_v11 }
 0x291   :  { %575 = vmatprep.subr.bf16.mxu1 %v2833_v14 }
 0x294   :  { %576 = vmatpush1.bf16.msra.mxu1 %v2839_v15 }
 0x295   :  { %577 = vmatprep.subr.bf16.mxu1 %v2848_v17 }
 0x298   :  { %578 = vmatpush1.bf16.msra.mxu1 %v2856_v19 }
 0x299   :  { %751 = vmatprep.subr.bf16.mxu1 %v2801_v7 }
 0x35e   :  { %v413_v24 = vpop.f32.mrb[4].mxu1 }
 0x35f   :  { %v415_v25 = vpop.f32.mrb[5].mxu1  ;;  %v422_v46 = vrot.slane %v413_v24, 2 }
 0x360   :  { %v423_v26 = vrot.slane %v415_v25, 2  ;;  %v417_v29 = vpop.f32.mrb[6].mxu1 }
 0x361   :  { %v418_v32 = vpop.f32.mrb[7].mxu1  ;;  %v426_v48 = vadd.f32 %v422_v46, %v2984_v47 }
 0x362   :  { %v427_v34 = vadd.f32 %v423_v26, %v2974_v30 }
 0x363   :  { %v428_v49 = vsub.f32 0.0, %v426_v48 }
 0x364   :  { %v429_v35 = vsub.f32 0.0, %v427_v34 }
 0x365   :  { %v430_v50 = vmul.f32 1.442695, %v428_v49 }
 0x366   :  { %v432_v36 = vmul.f32 1.442695, %v429_v35  ;;  %v462_v35 = vrot.slane %v2940_v56, 5 }
 0x368   :  { %2508 = vpow2.f32 %v432_v36 }
 0x369   :  { %2510 = vtanh.f32 %v427_v34 }
 0x372   :  { %v2509_v37 = vpop.eup %2508 }
 0x373   :  { %v435_v38 = vadd.f32 1.0, %v2509_v37  ;;  %v2511_v40 = vpop.eup %2510  ;;  %v3017_v37 = vsel %vm2944_vm9, %v2940_v56, %v462_v35 }
 0x375   :  { %2512 = vrcp.f32 %v435_v38 }
 0x376   :  { %2514 = vpow2.f32 %v430_v50 }
 0x37f   :  { %v2513_v42 = vpop.eup %2512 }
 0x380   :  { %v441_v43 = vsel %vm61_vm1, %v2513_v42, %v2511_v40  ;;  %v2515_v51 = vpop.eup %2514 }
 0x381   :  { %447 = vrot.lane.b32.xlu1 %v441_v43, %s2713_s2  ;;  %v434_v52 = vadd.f32 1.0, %v2515_v51 }
 0x383   :  { %2516 = vrcp.f32 %v434_v52 }
 0x38d   :  { %v2517_v53 = vpop.eup %2516 }
 0x38e   :  { %v445_v61 = vmul.f32 %v2517_v53, %v443_v59 }
 0x3f3   :  { %v448_v55 = vpop.permute.xlu1 %447 }
 0x3f4   :  { %v450_v57 = vmul.f32 %v2517_v53, %v448_v55 }
 0x3f6   :  { %452 = vrot.lane.b32.xlu0 %v450_v57, %s2713_s2 }
 0x468   :  { %v453_v62 = vpop.permute.xlu0 %452 }
 0x469   :  { %v455_v63 = vadd.f32 %v453_v62, %v445_v61 }
 0x46b   :  { %2518 = vtanh.f32 %v455_v63  ;;  %v538_v50 = vrot.slane %v455_v63, 1  ;;  %v558_v63 = vrot.slane %v2918_v39, 7 }
 0x475   :  { %v2519_v0 = vpop.eup %2518 }
 0x476   :  { %458 = vrot.lane.b32.xlu1 %v2519_v0, %s2713_s2 }
 0x4e8   :  { %v459_v1 = vpop.permute.xlu1 %458 }
 0x4e9   :  { %v2989_v3 = vmul.f32 %v459_v1, %v441_v43 }
 0x4eb   :  { %v468_v4 = vpack.c.bf16 %v2989_v3, %v2989_v3 }
 0x4ed   :  { %v470_v5 = vrot.slane %v468_v4, 3 }
 0x4ef   :  { %2372 = vmatmul.mubr.msk.bf16.vlgmr.msra.gmra.mrb[4].mxu0 %vm281_vm10, %v470_v5 }
 0x4f0   :  { %661 = vmatpush1.bf16.msra.mxu0 %v2806_v8  ;;  %692 = vmatprep.mubr.bf16.mxu0 %v2712_v2 }
 0x4f1   :  { %662 = vmatprep.subr.bf16.mxu0 %v2815_v10 }
 0x4f4   :  { %663 = vmatpush1.bf16.msra.mxu0 %v2821_v11 }
 0x4f5   :  { %664 = vmatprep.subr.bf16.mxu0 %v2833_v14 }
 0x4f8   :  { %665 = vmatpush1.bf16.msra.mxu0 %v2839_v15 }
 0x4f9   :  { %666 = vmatprep.subr.bf16.mxu0 %v2848_v17 }
 0x4fc   :  { %667 = vmatpush1.bf16.msra.mxu0 %v2856_v19 }
 0x4fd   :  { %840 = vmatprep.subr.bf16.mxu0 %v2801_v7 }
 0x5c2   :  { %v508_v9 = vpop.f32.mrb[4].mxu0 }
 0x5c3   :  { %v510_v12 = vpop.f32.mrb[5].mxu0  ;;  %v517_v36 = vrot.slane %v508_v9, 3  ;;  %v3040_v9 = vsel %vm2920_vm4, %v2918_v39, %v558_v63  ;;  %v557_v39 = vrot.slane %v2940_v56, 7 }
 0x5c4   :  { %v518_v13 = vrot.slane %v510_v12, 3  ;;  %v512_v16 = vpop.f32.mrb[6].mxu0 }
 0x5c5   :  { %v513_v21 = vpop.f32.mrb[7].mxu0  ;;  %v521_v38 = vadd.f32 %v517_v36, %v3017_v37 }
 0x5c6   :  { %v522_v22 = vadd.f32 %v518_v13, %v3007_v20 }
 0x5c7   :  { %v523_v40 = vsub.f32 0.0, %v521_v38 }
 0x5c8   :  { %v524_v23 = vsub.f32 0.0, %v522_v22 }
 0x5c9   :  { %v525_v42 = vmul.f32 1.442695, %v523_v40 }
 0x5ca   :  { %v527_v24 = vmul.f32 1.442695, %v524_v23 }
 0x5cc   :  { %2520 = vpow2.f32 %v527_v24 }
 0x5cd   :  { %2522 = vtanh.f32 %v522_v22 }
 0x5d6   :  { %v2521_v25 = vpop.eup %2520 }
 0x5d7   :  { %v530_v26 = vadd.f32 1.0, %v2521_v25  ;;  %v2523_v29 = vpop.eup %2522 }
 0x5d9   :  { %2524 = vrcp.f32 %v530_v26 }
 0x5da   :  { %2526 = vpow2.f32 %v525_v42 }
 0x5e3   :  { %v2525_v32 = vpop.eup %2524 }
 0x5e4   :  { %v536_v34 = vsel %vm61_vm1, %v2525_v32, %v2523_v29  ;;  %v2527_v43 = vpop.eup %2526  ;;  %v3050_v29 = vsel %vm2944_vm9, %v2940_v56, %v557_v39 }
 0x5e5   :  { %542 = vrot.lane.b32.xlu0 %v536_v34, %s2713_s2  ;;  %v529_v44 = vadd.f32 1.0, %v2527_v43 }
 0x5e7   :  { %2528 = vrcp.f32 %v529_v44 }
 0x5f1   :  { %v2529_v46 = vpop.eup %2528 }
 0x5f2   :  { %v540_v51 = vmul.f32 %v2529_v46, %v538_v50 }
 0x657   :  { %v543_v48 = vpop.permute.xlu0 %542 }
 0x658   :  { %v545_v49 = vmul.f32 %v2529_v46, %v543_v48 }
 0x65a   :  { %547 = vrot.lane.b32.xlu1 %v545_v49, %s2713_s2 }
 0x6cc   :  { %v548_v52 = vpop.permute.xlu1 %547 }
 0x6cd   :  { %v550_v53 = vadd.f32 %v548_v52, %v540_v51 }
 0x6cf   :  { %2530 = vtanh.f32 %v550_v53  ;;  %v635_v44 = vrot.slane %v550_v53, 1 }
 0x6d9   :  { %v2531_v55 = vpop.eup %2530 }
 0x6da   :  { %553 = vrot.lane.b32.xlu0 %v2531_v55, %s2713_s2 }
 0x74c   :  { %v554_v57 = vpop.permute.xlu0 %553 }
 0x74d   :  { %v3022_v59 = vmul.f32 %v554_v57, %v536_v34 }
 0x74f   :  { %v563_v61 = vpack.c.bf16 %v3022_v59, %v3022_v59 }
 0x751   :  { %v565_v62 = vshrl.u32 %v563_v61, 16 }
 0x753   :  { %v567_v0 = vrot.slane %v565_v62, 2 }
 0x755   :  { %2373 = vmatmul.mubr.msk.bf16.vlgmr.msra.gmra.mrb[8].mxu1 %vm281_vm10, %v567_v0 }
 0x756   :  { %752 = vmatpush1.bf16.msra.mxu1 %v2806_v8  ;;  %783 = vmatprep.mubr.bf16.mxu1 %v2712_v2 }
 0x757   :  { %753 = vmatprep.subr.bf16.mxu1 %v2815_v10 }
 0x75a   :  { %754 = vmatpush1.bf16.msra.mxu1 %v2821_v11 }
 0x75b   :  { %755 = vmatprep.subr.bf16.mxu1 %v2833_v14 }
 0x75e   :  { %756 = vmatpush1.bf16.msra.mxu1 %v2839_v15 }
 0x75f   :  { %757 = vmatprep.subr.bf16.mxu1 %v2848_v17 }
 0x762   :  { %758 = vmatpush1.bf16.msra.mxu1 %v2856_v19 }
 0x763   :  { %930 = vmatprep.subr.bf16.mxu1 %v2801_v7 }
 0x828   :  { %v605_v1 = vpop.f32.mrb[8].mxu1 }
 0x829   :  { %v607_v4 = vpop.f32.mrb[9].mxu1  ;;  %v614_v26 = vrot.slane %v605_v1, 4 }
 0x82a   :  { %v615_v5 = vrot.slane %v607_v4, 4  ;;  %v609_v6 = vpop.f32.mrb[10].mxu1 }
 0x82b   :  { %v610_v12 = vpop.f32.mrb[11].mxu1  ;;  %v618_v32 = vadd.f32 %v614_v26, %v3050_v29 }
 0x82c   :  { %v619_v13 = vadd.f32 %v615_v5, %v3040_v9 }
 0x82d   :  { %v620_v34 = vsub.f32 0.0, %v618_v32 }
 0x82e   :  { %v621_v16 = vsub.f32 0.0, %v619_v13 }
 0x82f   :  { %v622_v35 = vmul.f32 1.442695, %v620_v34 }
 0x830   :  { %v624_v21 = vmul.f32 1.442695, %v621_v16 }
 0x832   :  { %2532 = vpow2.f32 %v624_v21 }
 0x833   :  { %2534 = vtanh.f32 %v619_v13 }
 0x83c   :  { %v2533_v22 = vpop.eup %2532 }
 0x83d   :  { %v627_v23 = vadd.f32 1.0, %v2533_v22  ;;  %v2535_v7 = vpop.eup %2534 }
 0x83f   :  { %2536 = vrcp.f32 %v627_v23 }
 0x840   :  { %2538 = vpow2.f32 %v622_v35 }
 0x849   :  { %v2537_v24 = vpop.eup %2536 }
 0x84a   :  { %v633_v25 = vsel %vm61_vm1, %v2537_v24, %v2535_v7  ;;  %v2539_v36 = vpop.eup %2538 }
 0x84b   :  { %639 = vrot.lane.b32.xlu1 %v633_v25, %s2713_s2  ;;  %v626_v38 = vadd.f32 1.0, %v2539_v36 }
 0x84d   :  { %2540 = vrcp.f32 %v626_v38 }
 0x857   :  { %v2541_v40 = vpop.eup %2540 }
 0x858   :  { %v637_v46 = vmul.f32 %v2541_v40, %v635_v44 }
 0x8bd   :  { %v640_v42 = vpop.permute.xlu1 %639 }
 0x8be   :  { %v642_v43 = vmul.f32 %v2541_v40, %v640_v42 }
 0x8c0   :  { %644 = vrot.lane.b32.xlu0 %v642_v43, %s2713_s2 }
 0x932   :  { %v645_v48 = vpop.permute.xlu0 %644 }
 0x933   :  { %v647_v49 = vadd.f32 %v645_v48, %v637_v46 }
 0x935   :  { %2542 = vtanh.f32 %v647_v49  ;;  %v724_v32 = vrot.slane %v647_v49, 1 }
 0x93f   :  { %v2543_v56 = vpop.eup %2542 }
 0x940   :  { %650 = vrot.lane.b32.xlu1 %v2543_v56, %s2713_s2 }
 0x9b2   :  { %v651_v50 = vpop.permute.xlu1 %650 }
 0x9b3   :  { %v3055_v51 = vmul.f32 %v651_v50, %v633_v25 }
 0x9b5   :  { %v654_v52 = vpack.c.bf16 %v3055_v51, %v3055_v51 }
 0x9b7   :  { %v656_v55 = vrot.slane %v654_v52, 2 }
 0x9b9   :  { %2374 = vmatmul.mubr.msk.bf16.vlgmr.msra.gmra.mrb[8].mxu0 %vm281_vm10, %v656_v55 }
 0x9ba   :  { %841 = vmatpush1.bf16.msra.mxu0 %v2806_v8  ;;  %872 = vmatprep.mubr.bf16.mxu0 %v2712_v2 }
 0x9bb   :  { %842 = vmatprep.subr.bf16.mxu0 %v2815_v10 }
 0x9be   :  { %843 = vmatpush1.bf16.msra.mxu0 %v2821_v11 }
 0x9bf   :  { %844 = vmatprep.subr.bf16.mxu0 %v2833_v14 }
 0x9c2   :  { %845 = vmatpush1.bf16.msra.mxu0 %v2839_v15 }
 0x9c3   :  { %846 = vmatprep.subr.bf16.mxu0 %v2848_v17 }
 0x9c6   :  { %847 = vmatpush1.bf16.msra.mxu0 %v2856_v19 }
 0xa8c   :  { %v694_v53 = vpop.f32.mrb[8].mxu0 }
 0xa8d   :  { %v696_v57 = vpop.f32.mrb[9].mxu0  ;;  %v703_v21 = vrot.slane %v694_v53, 5 }
 0xa8e   :  { %v704_v61 = vrot.slane %v696_v57, 5  ;;  %v698_v62 = vpop.f32.mrb[10].mxu0 }
 0xa8f   :  { %v699_v0 = vpop.f32.mrb[11].mxu0  ;;  %v707_v22 = vadd.f32 %v703_v21, %v2951_v60 }
 0xa90   :  { %v708_v63 = vadd.f32 %v704_v61, %v2928_v45 }
 0xa91   :  { %v709_v23 = vsub.f32 0.0, %v707_v22 }
 0xa92   :  { %v710_v1 = vsub.f32 0.0, %v708_v63 }
 0xa93   :  { %v711_v7 = vmul.f32 1.442695, %v709_v23 }
 0xa94   :  { %v713_v4 = vmul.f32 1.442695, %v710_v1 }
 0xa96   :  { %2544 = vpow2.f32 %v713_v4 }
 0xa97   :  { %2546 = vtanh.f32 %v708_v63 }
 0xaa0   :  { %v2545_v5 = vpop.eup %2544 }
 0xaa1   :  { %v716_v6 = vadd.f32 1.0, %v2545_v5  ;;  %v2547_v12 = vpop.eup %2546 }
 0xaa3   :  { %2548 = vrcp.f32 %v716_v6 }
 0xaa4   :  { %2550 = vpow2.f32 %v711_v7 }
 0xaad   :  { %v2549_v13 = vpop.eup %2548 }
 0xaae   :  { %v722_v16 = vsel %vm61_vm1, %v2549_v13, %v2547_v12  ;;  %v2551_v45 = vpop.eup %2550 }
 0xaaf   :  { %728 = vrot.lane.b32.xlu0 %v722_v16, %s2713_s2  ;;  %v715_v24 = vadd.f32 1.0, %v2551_v45 }
 0xab1   :  { %2552 = vrcp.f32 %v715_v24 }
 0xabb   :  { %v2553_v25 = vpop.eup %2552 }
 0xabc   :  { %v726_v34 = vmul.f32 %v2553_v25, %v724_v32 }
 0xb21   :  { %v729_v39 = vpop.permute.xlu0 %728 }
 0xb22   :  { %v731_v26 = vmul.f32 %v2553_v25, %v729_v39 }
 0xb24   :  { %733 = vrot.lane.b32.xlu1 %v731_v26, %s2713_s2 }
 0xb96   :  { %v734_v35 = vpop.permute.xlu1 %733 }
 0xb97   :  { %v736_v36 = vadd.f32 %v734_v35, %v726_v34 }
 0xb99   :  { %2554 = vtanh.f32 %v736_v36  ;;  %v815_v4 = vrot.slane %v736_v36, 1 }
 0xba3   :  { %v2555_v38 = vpop.eup %2554 }
 0xba4   :  { %739 = vrot.lane.b32.xlu0 %v2555_v38, %s2713_s2 }
 0xc16   :  { %v740_v60 = vpop.permute.xlu0 %739 }
 0xc17   :  { %v3075_v40 = vmul.f32 %v740_v60, %v722_v16 }
 0xc19   :  { %v743_v42 = vpack.c.bf16 %v3075_v40, %v3075_v40 }
 0xc1b   :  { %v745_v43 = vshrl.u32 %v743_v42, 16 }
 0xc1d   :  { %v747_v44 = vrot.slane %v745_v43, 1 }
 0xc1f   :  { %2375 = vmatmul.mubr.msk.bf16.vlgmr.msra.gmra.mrb[12].mxu1 %vm281_vm10, %v747_v44 }
 0xc20   :  { %931 = vmatpush1.bf16.msra.mxu1 %v2806_v8  ;;  %962 = vmatprep.mubr.bf16.mxu1 %v2712_v2 }
 0xc21   :  { %932 = vmatprep.subr.bf16.mxu1 %v2815_v10 }
 0xc24   :  { %933 = vmatpush1.bf16.msra.mxu1 %v2821_v11 }
 0xc25   :  { %934 = vmatprep.subr.bf16.mxu1 %v2833_v14 }
 0xc28   :  { %935 = vmatpush1.bf16.msra.mxu1 %v2839_v15 }
 0xc29   :  { %936 = vmatprep.subr.bf16.mxu1 %v2848_v17 }
 0xc2c   :  { %937 = vmatpush1.bf16.msra.mxu1 %v2856_v19 }
 0xcf2   :  { %v785_v46 = vpop.f32.mrb[12].mxu1 }
 0xcf3   :  { %v787_v48 = vpop.f32.mrb[13].mxu1  ;;  %v794_v19 = vrot.slane %v785_v46, 6 }
 0xcf4   :  { %v795_v49 = vrot.slane %v787_v48, 6  ;;  %v789_v56 = vpop.f32.mrb[14].mxu1 }
 0xcf5   :  { %v790_v50 = vpop.f32.mrb[15].mxu1  ;;  %v798_v53 = vadd.f32 %v794_v19, %v2984_v47 }
 0xcf6   :  { %v799_v8 = vadd.f32 %v795_v49, %v2974_v30 }
 0xcf7   :  { %v800_v57 = vsub.f32 0.0, %v798_v53 }
 0xcf8   :  { %v801_v52 = vsub.f32 0.0, %v799_v8 }
 0xcf9   :  { %v802_v61 = vmul.f32 1.442695, %v800_v57 }
 0xcfa   :  { %v804_v55 = vmul.f32 1.442695, %v801_v52 }
 0xcfc   :  { %2556 = vpow2.f32 %v804_v55 }
 0xcfd   :  { %2558 = vtanh.f32 %v799_v8 }
 0xd06   :  { %v2557_v10 = vpop.eup %2556 }
 0xd07   :  { %v807_v11 = vadd.f32 1.0, %v2557_v10  ;;  %v2559_v14 = vpop.eup %2558 }
 0xd09   :  { %2560 = vrcp.f32 %v807_v11 }
 0xd0a   :  { %2562 = vpow2.f32 %v802_v61 }
 0xd13   :  { %v2561_v15 = vpop.eup %2560 }
 0xd14   :  { %v813_v17 = vsel %vm61_vm1, %v2561_v15, %v2559_v14  ;;  %v2563_v30 = vpop.eup %2562 }
 0xd15   :  { %819 = vrot.lane.b32.xlu1 %v813_v17, %s2713_s2  ;;  %v806_v62 = vadd.f32 1.0, %v2563_v30 }
 0xd17   :  { %2564 = vrcp.f32 %v806_v62 }
 0xd21   :  { %v2565_v0 = vpop.eup %2564 }
 0xd22   :  { %v817_v5 = vmul.f32 %v2565_v0, %v815_v4 }
 0xd87   :  { %v820_v63 = vpop.permute.xlu1 %819 }
 0xd88   :  { %v822_v1 = vmul.f32 %v2565_v0, %v820_v63 }
 0xd8a   :  { %824 = vrot.lane.b32.xlu0 %v822_v1, %s2713_s2 }
 0xdfc   :  { %v825_v6 = vpop.permute.xlu0 %824 }
 0xdfd   :  { %v827_v12 = vadd.f32 %v825_v6, %v817_v5 }
 0xdff   :  { %2566 = vtanh.f32 %v827_v12  ;;  %v904_v8 = vrot.slane %v827_v12, 1 }
 0xe09   :  { %v2567_v13 = vpop.eup %2566 }
 0xe0a   :  { %830 = vrot.lane.b32.xlu1 %v2567_v13, %s2713_s2 }
 0xe7c   :  { %v831_v47 = vpop.permute.xlu1 %830 }
 0xe7d   :  { %v3095_v16 = vmul.f32 %v831_v47, %v813_v17 }
 0xe7f   :  { %v834_v21 = vpack.c.bf16 %v3095_v16, %v3095_v16 }
 0xe81   :  { %v836_v22 = vrot.slane %v834_v21, 1 }
 0xe83   :  { %2376 = vmatmul.mubr.msk.bf16.vlgmr.msra.gmra.mrb[12].mxu0 %vm281_vm10, %v836_v22 }
 0xe84   :  { %1173 = vmatprep.mubr.bf16.mxu0 %v2712_v2 }
 0xf56   :  { %v874_v23 = vpop.f32.mrb[12].mxu0 }
 0xf57   :  { %v876_v7 = vpop.f32.mrb[13].mxu0  ;;  %v883_v42 = vrot.slane %v874_v23, 7 }
 0xf58   :  { %v884_v45 = vrot.slane %v876_v7, 7  ;;  %v878_v24 = vpop.f32.mrb[14].mxu0 }
 0xf59   :  { %v879_v25 = vpop.f32.mrb[15].mxu0  ;;  %v887_v43 = vadd.f32 %v883_v42, %v3017_v37  ;;  %v2482_v42 = vld [vmem:[%s3546_s4 + $0x24] ss:$8 sps:$4 sm:$0xff]  }
 0xf5a   :  { %v888_v39 = vadd.f32 %v884_v45, %v3007_v20 }
 0xf5b   :  { %v889_v44 = vsub.f32 0.0, %v887_v43  ;;  %v3165_v43 = vld [vmem:[%s3548_s6 + $0x24] ss:$8 sps:$4 sm:$0xff]  }
 0xf5c   :  { %v890_v26 = vsub.f32 0.0, %v888_v39 }
 0xf5d   :  { %v891_v46 = vmul.f32 1.442695, %v889_v44  ;;  %v2480_v44 = vld [vmem:[%s3546_s4 + $0x20] ss:$8 sps:$4 sm:$0xff]  }
 0xf5e   :  { %v893_v32 = vmul.f32 1.442695, %v890_v26 }
 0xf60   :  { %2568 = vpow2.f32 %v893_v32  ;;  %v2468_v32 = vld [vmem:[%s3546_s4] ss:$8 sps:$4 sm:$0xff]  }
 0xf61   :  { %2570 = vtanh.f32 %v888_v39  ;;  %v2470_v39 = vld [vmem:[%s3546_s4 + $0x4] ss:$8 sps:$4 sm:$0xff]  }
 0xf62   :  { %1141 = vmatprep.subr.bf16.mxu0 %v2470_v39  ;;  %v1086_v39 = vld [vmem:[%s3547_s5] sm:$0x3] }
 0xf63   :  { %1142 = vmatpush1.bf16.msra.mxu0 %v2468_v32 }
 0xf6a   :  { %v2569_v34 = vpop.eup %2568 }
 0xf6b   :  { %v896_v35 = vadd.f32 1.0, %v2569_v34  ;;  %v2571_v36 = vpop.eup %2570  ;;  %v3137_v34 = vld [vmem:[%s3548_s6] ss:$8 sps:$4 sm:$0xff]  }
 0xf6d   :  { %2572 = vrcp.f32 %v896_v35  ;;  %v2476_v35 = vld [vmem:[%s3546_s4 + $0x14] ss:$8 sps:$4 sm:$0xff]  }
 0xf6e   :  { %2574 = vpow2.f32 %v891_v46  ;;  %1143 = vmatprep.subr.bf16.mxu0 %v2476_v35  ;;  %v3173_v46 = vld [vmem:[%s3548_s6 + $0x20] ss:$8 sps:$4 sm:$0xff]  }
 0xf77   :  { %v2573_v38 = vpop.eup %2572 }
 0xf78   :  { %v902_v60 = vsel %vm61_vm1, %v2573_v38, %v2571_v36  ;;  %v2575_v20 = vpop.eup %2574  ;;  %v3147_v36 = vld [vmem:[%s3548_s6 + $0x14] ss:$8 sps:$4 sm:$0xff]   ;;  %v2474_v38 = vld [vmem:[%s3546_s4 + $0x10] ss:$8 sps:$4 sm:$0xff]  }
 0xf79   :  { %908 = vrot.lane.b32.xlu0 %v902_v60, %s2713_s2  ;;  %v895_v48 = vadd.f32 1.0, %v2575_v20  ;;  %1144 = vmatpush1.bf16.msra.mxu0 %v2474_v38  ;;  %v2488_v20 = vld [vmem:[%s3546_s4 + $0x34] ss:$8 sps:$4 sm:$0xff]  }
 0xf7a   :  { %1145 = vmatprep.subr.bf16.mxu0 %v2482_v42 }
 0xf7b   :  { %2576 = vrcp.f32 %v895_v48  ;;  %v3183_v48 = vld [vmem:[%s3548_s6 + $0x34] ss:$8 sps:$4 sm:$0xff]  }
 0xf7d   :  { %1146 = vmatpush1.bf16.msra.mxu0 %v2480_v44 }
 0xf7e   :  { %1147 = vmatprep.subr.bf16.mxu0 %v2488_v20 }
 0xf85   :  { %v2577_v49 = vpop.eup %2576 }
 0xf86   :  { %v906_v52 = vmul.f32 %v2577_v49, %v904_v8 }
 0xfeb   :  { %v909_v56 = vpop.permute.xlu0 %908 }
 0xfec   :  { %v911_v50 = vmul.f32 %v2577_v49, %v909_v56  ;;  %v2486_v56 = vld [vmem:[%s3546_s4 + $0x30] ss:$8 sps:$4 sm:$0xff]  }
 0xfed   :  { %1148 = vmatpush1.bf16.msra.mxu0 %v2486_v56 }
 0xfee   :  { %913 = vrot.lane.b32.xlu1 %v911_v50, %s2713_s2  ;;  %v3191_v50 = vld [vmem:[%s3548_s6 + $0x30] ss:$8 sps:$4 sm:$0xff]  }
0x1060   :  { %v914_v55 = vpop.permute.xlu1 %913 }
0x1061   :  { %v916_v10 = vadd.f32 %v914_v55, %v906_v52  ;;  %v1016_v52 = vrot.slane %v3095_v16, 5 }
0x1063   :  { %2578 = vtanh.f32 %v916_v10  ;;  %v988_v45 = vrot.slane %v916_v10, 1  ;;  %v1020_v10 = vrot.slane %v3075_v40, 7 }
0x106d   :  { %v2579_v11 = vpop.eup %2578 }
0x106e   :  { %919 = vrot.lane.b32.xlu0 %v2579_v11, %s2713_s2 }
0x10e0   :  { %v920_v37 = vpop.permute.xlu0 %919 }
0x10e1   :  { %v3108_v14 = vmul.f32 %v920_v37, %v902_v60  ;;  %v3155_v60 = vld [vmem:[%s3548_s6 + $0x10] ss:$8 sps:$4 sm:$0xff]  }
0x10e3   :  { %v923_v15 = vpack.c.bf16 %v3108_v14, %v3108_v14  ;;  %v1012_v8 = vrot.slane %v3108_v14, 3 }
0x10e5   :  { %v925_v17 = vshrl.u32 %v923_v15, 16  ;;  %v1014_v37 = vsel %vm74_vm11, %v2989_v3, %v1012_v8 }
0x10e7   :  { %2377 = vmatmul.mubr.msk.bf16.vlgmr.msra.gmra.mrb[16].mxu1 %vm281_vm10, %v925_v17  ;;  %v1032_v17 = vrot.slane %v2989_v3, 5 }
0x10e8   :  { %1270 = vmatprep.mubr.bf16.mxu1 %v2712_v2 }
0x11ba   :  { %v964_v19 = vpop.f32.mrb[16].mxu1 }
0x11bb   :  { %v966_v53 = vpop.f32.mrb[17].mxu1 }
0x11bc   :  { %v972_v57 = vadd.f32 %v966_v53, %v3040_v9  ;;  %v968_v61 = vpop.f32.mrb[18].mxu1  ;;  %v971_v9 = vadd.f32 %v964_v19, %v3050_v29  ;;  %v3129_v29 = vld [vmem:[%s3548_s6 + $0x4] ss:$8 sps:$4 sm:$0xff]   ;;  %v1024_v19 = vrot.slane %v3055_v51, 1  ;;  %v1018_v53 = vsel %vm74_vm11, %v3022_v59, %v1016_v52 }
0x11bd   :  { %v969_v30 = vpop.f32.mrb[19].mxu1  ;;  %1238 = vmatprep.subr.bf16.mxu1 %v3129_v29  ;;  %1332 = vmatprep.subr.bf16.mxu0 %v3129_v29  ;;  %v1022_v61 = vsel %vm74_vm11, %v3055_v51, %v1020_v10 }
0x11be   :  { %v974_v62 = vsub.f32 0.0, %v972_v57  ;;  %v973_v12 = vsub.f32 0.0, %v971_v9  ;;  %1239 = vmatpush1.bf16.msra.mxu1 %v3137_v34  ;;  %v1026_v3 = vsel %vm74_vm11, %v3075_v40, %v1024_v19  ;;  %v1049_v51 = vrot.slane %v1022_v61, 1 }
0x11bf   :  { %1240 = vmatprep.subr.bf16.mxu1 %v3147_v36  ;;  %v1052_v40 = vrot.slane %v1026_v3, 7 }
0x11c0   :  { %v977_v0 = vmul.f32 1.442695, %v974_v62  ;;  %v975_v13 = vmul.f32 1.442695, %v973_v12  ;;  %v1043_v62 = vrot.slane %v1014_v37, 5 }
0x11c2   :  { %2580 = vpow2.f32 %v977_v0  ;;  %1241 = vmatpush1.bf16.msra.mxu1 %v3155_v60 }
0x11c3   :  { %2582 = vtanh.f32 %v972_v57  ;;  %1242 = vmatprep.subr.bf16.mxu1 %v3165_v43  ;;  %v1028_v57 = vrot.slane %v3022_v59, 3 }
0x11c5   :  { %v1030_v59 = vsel %vm74_vm11, %v3095_v16, %v1028_v57 }
0x11c6   :  { %1243 = vmatpush1.bf16.msra.mxu1 %v3173_v46  ;;  %v1055_v9 = vrot.slane %v1030_v59, 5 }
0x11c7   :  { %1244 = vmatprep.subr.bf16.mxu1 %v3183_v48 }
0x11ca   :  { %1245 = vmatpush1.bf16.msra.mxu1 %v3191_v50 }
0x11cb   :  { %1427 = vmatprep.subr.bf16.mxu1 %v3129_v29 }
0x11cc   :  { %v2581_v63 = vpop.eup %2580 }
0x11cd   :  { %v980_v1 = vadd.f32 1.0, %v2581_v63  ;;  %v2583_v4 = vpop.eup %2582  ;;  %1271 = vmatmul.mubr.bf16.vlgmr.msra.gmra.mrb[20].mxu1 %v2712_v2  ;;  %v1036_v63 = vrot.slane %v2956_v18, 7 }
0x11ce   :  { %1428 = vmatpush1.bf16.msra.mxu1 %v3137_v34  ;;  %1459 = vmatprep.mubr.bf16.mxu1 %v2712_v2 }
0x11cf   :  { %2584 = vrcp.f32 %v980_v1  ;;  %1429 = vmatprep.subr.bf16.mxu1 %v3147_v36  ;;  %v1046_v1 = vrot.slane %v1018_v53, 3 }
0x11d0   :  { %2586 = vpow2.f32 %v975_v13 }
0x11d2   :  { %1430 = vmatpush1.bf16.msra.mxu1 %v3155_v60 }
0x11d3   :  { %1431 = vmatprep.subr.bf16.mxu1 %v3165_v43 }
0x11d6   :  { %1432 = vmatpush1.bf16.msra.mxu1 %v3173_v46 }
0x11d7   :  { %1433 = vmatprep.subr.bf16.mxu1 %v3183_v48 }
0x11d9   :  { %v2585_v5 = vpop.eup %2584 }
0x11da   :  { %v3117_v6 = vsel %vm61_vm1, %v2585_v5, %v2583_v4  ;;  %v2587_v47 = vpop.eup %2586  ;;  %1434 = vmatpush1.bf16.msra.mxu1 %v3191_v50  ;;  %v1034_v4 = vsel %vm74_vm11, %v3108_v14, %v1032_v17  ;;  %v1091_v17 = vrot.slane %v1086_v39, %v2935_v54 }
0x11db   :  { %992 = vrot.lane.b32.xlu1 %v3117_v6, %s2713_s2  ;;  %v979_v21 = vadd.f32 1.0, %v2587_v47  ;;  %1613 = vmatprep.subr.bf16.mxu1 %v3129_v29  ;;  %v1058_v12 = vrot.slane %v1034_v4, 3 }
0x11dd   :  { %2588 = vrcp.f32 %v979_v21 }
0x11e7   :  { %v2589_v22 = vpop.eup %2588 }
0x11e8   :  { %v990_v24 = vmul.f32 %v2589_v22, %v988_v45 }
0x124d   :  { %v993_v23 = vpop.permute.xlu1 %992 }
0x124e   :  { %v995_v7 = vmul.f32 %v2589_v22, %v993_v23 }
0x1250   :  { %997 = vrot.lane.b32.xlu0 %v995_v7, %s2713_s2 }
0x12a0   :  { %v1272_v7 = vpop.f32.mrb[20].mxu1 }
0x12a1   :  { %v1274_v45 = vpop.f32.mrb[21].mxu1  ;;  %v1281_v57 = vrot.slane %v1272_v7, 1 }
0x12a2   :  { %v1282_v44 = vrot.slane %v1274_v45, 1 }
0x12c2   :  { %v998_v25 = vpop.permute.xlu0 %997 }
0x12c3   :  { %v1000_v26 = vadd.f32 %v998_v25, %v990_v24  ;;  %v1276_v24 = vpop.f32.mrb[22].mxu1 }
0x12c4   :  { %v1277_v25 = vpop.f32.mrb[23].mxu1 }
0x12c5   :  { %2590 = vtanh.f32 %v1000_v26  ;;  %v1095_v26 = vrot.slane %v1086_v39, %v100_v33 }
0x12cf   :  { %v2591_v49 = vpop.eup %2590 }
0x12d0   :  { %1003 = vrot.lane.b32.xlu1 %v2591_v49, %s2713_s2 }
0x1342   :  { %v1004_v55 = vpop.permute.xlu1 %1003 }
0x1343   :  { %v1006_v11 = vmul.f32 %v1004_v55, %v3117_v6 }
0x1345   :  { %v1008_v15 = vrot.slane %v1006_v11, 1  ;;  %v1038_v6 = vsel %vm74_vm11, %v1006_v11, %v1036_v63 }
0x1346   :  { %v1061_v47 = vrot.slane %v1038_v6, 1 }
0x1347   :  { %v1010_v30 = vsel %vm74_vm11, %v2956_v18, %v1008_v15 }
0x1348   :  { %v1040_v0 = vrot.slane %v1010_v30, 7 }
0x134a   :  { %v1064_v5 = vsel %vm1063_vm12, %v1040_v0, %v1043_v62 }
0x134b   :  { %v1066_v18 = vsel %vm1065_vm13, %v1064_v5, %v1046_v1 }
0x134c   :  { %v1068_v16 = vsel %vm1067_vm14, %v1066_v18, %v1049_v51 }
0x134d   :  { %v1070_v13 = vsel %vm1069_vm15, %v1068_v16, %v1052_v40 }
0x134e   :  { %v1072_v14 = vsel %vm1071_vm0, %v1070_v13, %v1055_v9 }
0x134f   :  { %v1074_v21 = vsel %vm1073_vm2, %v1072_v14, %v1058_v12 }
0x1350   :  { %v1076_v22 = vsel %vm1075_vm3, %v1074_v21, %v1061_v47 }
0x1351   :  { %v1077_v23 = vpack.c.bf16 %v1076_v22, %v1076_v22 }
0x1353   :  { %2386 = vmatmul.mubr.msk.bf16.vlgmr.msra.gmra.mrb[16].mxu0 %vm281_vm10, %v1077_v23 }
0x1354   :  { %1333 = vmatpush1.bf16.msra.mxu0 %v3137_v34  ;;  %1364 = vmatprep.mubr.bf16.mxu0 %v2712_v2 }
0x1355   :  { %1334 = vmatprep.subr.bf16.mxu0 %v3147_v36 }
0x1358   :  { %1335 = vmatpush1.bf16.msra.mxu0 %v3155_v60 }
0x1359   :  { %1336 = vmatprep.subr.bf16.mxu0 %v3165_v43 }
0x135c   :  { %1337 = vmatpush1.bf16.msra.mxu0 %v3173_v46 }
0x135d   :  { %1338 = vmatprep.subr.bf16.mxu0 %v3183_v48 }
0x1360   :  { %1339 = vmatpush1.bf16.msra.mxu0 %v3191_v50 }
0x1361   :  { %1524 = vmatprep.subr.bf16.mxu0 %v3129_v29 }
0x1426   :  { %v1175_v32 = vpop.f32.mrb[16].mxu0 }
0x1427   :  { %v1177_v35 = vpop.f32.mrb[17].mxu0  ;;  %v3275_v19 = vadd.f32 %v1175_v32, %v1091_v17 }
0x1428   :  { %v3262_v38 = vadd.f32 %v1177_v35, %v1095_v26  ;;  %v1179_v42 = vpop.f32.mrb[18].mxu0 }
0x1429   :  { %v1180_v20 = vpop.f32.mrb[19].mxu0  ;;  %v1192_v53 = vrot.slane %v3275_v19, 1  ;;  %v1510_v41 = vrot.slane %v3275_v19, 7 }
0x142a   :  { %v1193_v49 = vrot.slane %v3262_v38, 1  ;;  %v1319_v47 = vrot.slane %v3262_v38, 3  ;;  %v1318_v20 = vrot.slane %v3275_v19, 3 }
0x142b   :  { %v3281_v61 = vsel %vm2944_vm9, %v3275_v19, %v1192_v53 }
0x142c   :  { %v3268_v56 = vsel %vm2920_vm4, %v3262_v38, %v1193_v49  ;;  %v1285_v30 = vadd.f32 %v1281_v57, %v3281_v61  ;;  %v3304_v7 = vsel %vm2920_vm4, %v3262_v38, %v1319_v47 }
0x142d   :  { %v1286_v8 = vadd.f32 %v1282_v44, %v3268_v56 }
0x142e   :  { %v1287_v3 = vsub.f32 0.0, %v1285_v30 }
0x142f   :  { %v1288_v52 = vsub.f32 0.0, %v1286_v8 }
0x1430   :  { %v1289_v62 = vmul.f32 1.442695, %v1287_v3 }
0x1431   :  { %v1291_v55 = vmul.f32 1.442695, %v1288_v52 }
0x1433   :  { %2592 = vpow2.f32 %v1291_v55 }
0x1434   :  { %2594 = vtanh.f32 %v1286_v8  ;;  %v3314_v8 = vsel %vm2944_vm9, %v3275_v19, %v1318_v20 }
0x143d   :  { %v2593_v33 = vpop.eup %2592 }
0x143e   :  { %v1294_v10 = vadd.f32 1.0, %v2593_v33  ;;  %v2595_v11 = vpop.eup %2594 }
0x1440   :  { %2596 = vrcp.f32 %v1294_v10 }
0x1441   :  { %2598 = vpow2.f32 %v1289_v62 }
0x144a   :  { %v2597_v37 = vpop.eup %2596 }
0x144b   :  { %v1300_v15 = vsel %vm61_vm1, %v2597_v37, %v2595_v11  ;;  %v2599_v0 = vpop.eup %2598 }
0x144c   :  { %1303 = vrot.lane.b32.xlu0 %v1300_v15, %s2713_s2  ;;  %v1293_v63 = vadd.f32 1.0, %v2599_v0 }
0x144e   :  { %2600 = vrcp.f32 %v1293_v63 }
0x1458   :  { %v2601_v59 = vpop.eup %2600 }
0x1459   :  { %v1301_v4 = vmul.f32 0.0, %v2601_v59 }
0x14be   :  { %v1304_v1 = vpop.permute.xlu0 %1303 }
0x14bf   :  { %v1306_v51 = vmul.f32 %v2601_v59, %v1304_v1 }
0x14c1   :  { %1308 = vrot.lane.b32.xlu1 %v1306_v51, %s2713_s2  ;;  %v1416_v51 = vrot.slane %v3262_v38, 5 }
0x1533   :  { %v1309_v5 = vpop.permute.xlu1 %1308 }
0x1534   :  { %v1311_v40 = vadd.f32 %v1309_v5, %v1301_v4 }
0x1536   :  { %2602 = vtanh.f32 %v1311_v40  ;;  %v1396_v53 = vrot.slane %v1311_v40, 1 }
0x1540   :  { %v2603_v6 = vpop.eup %2602 }
0x1541   :  { %1314 = vrot.lane.b32.xlu0 %v2603_v6, %s2713_s2 }
0x15b3   :  { %v1315_v18 = vpop.permute.xlu0 %1314 }
0x15b4   :  { %v3286_v9 = vmul.f32 %v1315_v18, %v1300_v15  ;;  %v3337_v18 = vsel %vm2920_vm4, %v3262_v38, %v1416_v51 }
0x15b6   :  { %v1324_v16 = vpack.c.bf16 %v3286_v9, %v3286_v9 }
0x15b8   :  { %v1326_v12 = vshrl.u32 %v1324_v16, 16 }
0x15ba   :  { %v1328_v13 = vrot.slane %v1326_v12, 3 }
0x15bc   :  { %2395 = vmatmul.mubr.msk.bf16.vlgmr.msra.gmra.mrb[20].mxu0 %vm281_vm10, %v1328_v13 }
0x15bd   :  { %1525 = vmatpush1.bf16.msra.mxu0 %v3137_v34  ;;  %1556 = vmatprep.mubr.bf16.mxu0 %v2712_v2 }
0x15be   :  { %1526 = vmatprep.subr.bf16.mxu0 %v3147_v36 }
0x15c1   :  { %1527 = vmatpush1.bf16.msra.mxu0 %v3155_v60 }
0x15c2   :  { %1528 = vmatprep.subr.bf16.mxu0 %v3165_v43 }
0x15c5   :  { %1529 = vmatpush1.bf16.msra.mxu0 %v3173_v46 }
0x15c6   :  { %1530 = vmatprep.subr.bf16.mxu0 %v3183_v48 }
0x15c9   :  { %1531 = vmatpush1.bf16.msra.mxu0 %v3191_v50 }
0x15ca   :  { %1704 = vmatprep.subr.bf16.mxu0 %v3129_v29 }
0x168f   :  { %v1366_v14 = vpop.f32.mrb[20].mxu0 }
0x1690   :  { %v1368_v21 = vpop.f32.mrb[21].mxu0  ;;  %v1375_v49 = vrot.slane %v1366_v14, 2 }
0x1691   :  { %v1376_v22 = vrot.slane %v1368_v21, 2  ;;  %v1370_v23 = vpop.f32.mrb[22].mxu0 }
0x1692   :  { %v1371_v45 = vpop.f32.mrb[23].mxu0  ;;  %v1379_v52 = vadd.f32 %v1375_v49, %v3314_v8 }
0x1693   :  { %v1380_v24 = vadd.f32 %v1376_v22, %v3304_v7 }
0x1694   :  { %v1381_v55 = vsub.f32 0.0, %v1379_v52 }
0x1695   :  { %v1382_v25 = vsub.f32 0.0, %v1380_v24 }
0x1696   :  { %v1383_v33 = vmul.f32 1.442695, %v1381_v55 }
0x1697   :  { %v1385_v39 = vmul.f32 1.442695, %v1382_v25 }
0x1699   :  { %2604 = vpow2.f32 %v1385_v39 }
0x169a   :  { %2606 = vtanh.f32 %v1380_v24  ;;  %v1415_v24 = vrot.slane %v3275_v19, 5 }
0x169c   :  { %v3347_v39 = vsel %vm2944_vm9, %v3275_v19, %v1415_v24 }
0x16a3   :  { %v2605_v26 = vpop.eup %2604 }
0x16a4   :  { %v1388_v32 = vadd.f32 1.0, %v2605_v26  ;;  %v2607_v35 = vpop.eup %2606 }
0x16a6   :  { %2608 = vrcp.f32 %v1388_v32 }
0x16a7   :  { %2610 = vpow2.f32 %v1383_v33 }
0x16b0   :  { %v2609_v42 = vpop.eup %2608 }
0x16b1   :  { %v1394_v44 = vsel %vm61_vm1, %v2609_v42, %v2607_v35  ;;  %v2611_v10 = vpop.eup %2610 }
0x16b2   :  { %1400 = vrot.lane.b32.xlu1 %v1394_v44, %s2713_s2  ;;  %v1387_v11 = vadd.f32 1.0, %v2611_v10 }
0x16b4   :  { %2612 = vrcp.f32 %v1387_v11 }
0x16be   :  { %v2613_v37 = vpop.eup %2612 }
0x16bf   :  { %v1398_v57 = vmul.f32 %v2613_v37, %v1396_v53 }
0x1724   :  { %v1401_v15 = vpop.permute.xlu1 %1400 }
0x1725   :  { %v1403_v17 = vmul.f32 %v2613_v37, %v1401_v15 }
0x1727   :  { %1405 = vrot.lane.b32.xlu0 %v1403_v17, %s2713_s2 }
0x1799   :  { %v1406_v30 = vpop.permute.xlu0 %1405 }
0x179a   :  { %v1408_v3 = vadd.f32 %v1406_v30, %v1398_v57 }
0x179c   :  { %2614 = vtanh.f32 %v1408_v3  ;;  %v1491_v55 = vrot.slane %v1408_v3, 1  ;;  %v1511_v3 = vrot.slane %v3262_v38, 7 }
0x179e   :  { %v3370_v51 = vsel %vm2920_vm4, %v3262_v38, %v1511_v3  ;;  %vm2315_vm4 = vcmask 1041409  }
0x17a6   :  { %v2615_v62 = vpop.eup %2614 }
0x17a7   :  { %1411 = vrot.lane.b32.xlu1 %v2615_v62, %s2713_s2 }
0x1819   :  { %v1412_v0 = vpop.permute.xlu1 %1411 }
0x181a   :  { %v3319_v63 = vmul.f32 %v1412_v0, %v1394_v44 }
0x181c   :  { %v1421_v59 = vpack.c.bf16 %v3319_v63, %v3319_v63 }
0x181e   :  { %v1423_v1 = vrot.slane %v1421_v59, 3 }
0x1820   :  { %2396 = vmatmul.mubr.msk.bf16.vlgmr.msra.gmra.mrb[24].mxu1 %vm281_vm10, %v1423_v1 }
0x1821   :  { %1614 = vmatpush1.bf16.msra.mxu1 %v3137_v34  ;;  %1645 = vmatprep.mubr.bf16.mxu1 %v2712_v2 }
0x1822   :  { %1615 = vmatprep.subr.bf16.mxu1 %v3147_v36 }
0x1825   :  { %1616 = vmatpush1.bf16.msra.mxu1 %v3155_v60 }
0x1826   :  { %1617 = vmatprep.subr.bf16.mxu1 %v3165_v43 }
0x1829   :  { %1618 = vmatpush1.bf16.msra.mxu1 %v3173_v46 }
0x182a   :  { %1619 = vmatprep.subr.bf16.mxu1 %v3183_v48 }
0x182d   :  { %1620 = vmatpush1.bf16.msra.mxu1 %v3191_v50 }
0x182e   :  { %1793 = vmatprep.subr.bf16.mxu1 %v3129_v29 }
0x18f3   :  { %v1461_v4 = vpop.f32.mrb[24].mxu1 }
0x18f4   :  { %v1463_v5 = vpop.f32.mrb[25].mxu1  ;;  %v1470_v25 = vrot.slane %v1461_v4, 3 }
0x18f5   :  { %v1471_v40 = vrot.slane %v1463_v5, 3  ;;  %v1465_v6 = vpop.f32.mrb[26].mxu1 }
0x18f6   :  { %v1466_v16 = vpop.f32.mrb[27].mxu1  ;;  %v1474_v26 = vadd.f32 %v1470_v25, %v3347_v39 }
0x18f7   :  { %v1475_v12 = vadd.f32 %v1471_v40, %v3337_v18 }
0x18f8   :  { %v1476_v32 = vsub.f32 0.0, %v1474_v26 }
0x18f9   :  { %v1477_v13 = vsub.f32 0.0, %v1475_v12 }
0x18fa   :  { %v1478_v35 = vmul.f32 1.442695, %v1476_v32 }
0x18fb   :  { %v1480_v47 = vmul.f32 1.442695, %v1477_v13 }
0x18fd   :  { %2616 = vpow2.f32 %v1480_v47 }
0x18fe   :  { %2618 = vtanh.f32 %v1475_v12 }
0x1907   :  { %v2617_v14 = vpop.eup %2616 }
0x1908   :  { %v1483_v21 = vadd.f32 1.0, %v2617_v14  ;;  %v2619_v22 = vpop.eup %2618  ;;  %v3380_v14 = vsel %vm2944_vm9, %v3275_v19, %v1510_v41  ;;  %vm2325_vm9 = vcmask 1046534  }
0x190a   :  { %2620 = vrcp.f32 %v1483_v21 }
0x190b   :  { %2622 = vpow2.f32 %v1478_v35 }
0x1914   :  { %v2621_v23 = vpop.eup %2620 }
0x1915   :  { %v1489_v45 = vsel %vm61_vm1, %v2621_v23, %v2619_v22  ;;  %v2623_v42 = vpop.eup %2622 }
0x1916   :  { %1495 = vrot.lane.b32.xlu0 %v1489_v45, %s2713_s2  ;;  %v1482_v44 = vadd.f32 1.0, %v2623_v42 }
0x1918   :  { %2624 = vrcp.f32 %v1482_v44 }
0x1922   :  { %v2625_v20 = vpop.eup %2624 }
0x1923   :  { %v1493_v33 = vmul.f32 %v2625_v20, %v1491_v55 }
0x1988   :  { %v1496_v49 = vpop.permute.xlu0 %1495 }
0x1989   :  { %v1498_v52 = vmul.f32 %v2625_v20, %v1496_v49 }
0x198b   :  { %1500 = vrot.lane.b32.xlu1 %v1498_v52, %s2713_s2 }
0x19fd   :  { %v1501_v10 = vpop.permute.xlu1 %1500 }
0x19fe   :  { %v1503_v11 = vadd.f32 %v1501_v10, %v1493_v33 }
0x1a00   :  { %2626 = vtanh.f32 %v1503_v11  ;;  %v1588_v35 = vrot.slane %v1503_v11, 1 }
0x1a0a   :  { %v2627_v37 = vpop.eup %2626 }
0x1a0b   :  { %1506 = vrot.lane.b32.xlu0 %v2627_v37, %s2713_s2 }
0x1a7d   :  { %v1507_v15 = vpop.permute.xlu0 %1506 }
0x1a7e   :  { %v3352_v17 = vmul.f32 %v1507_v15, %v1489_v45 }
0x1a80   :  { %v1516_v53 = vpack.c.bf16 %v3352_v17, %v3352_v17 }
0x1a82   :  { %v1518_v57 = vshrl.u32 %v1516_v53, 16 }
0x1a84   :  { %v1520_v30 = vrot.slane %v1518_v57, 2 }
0x1a86   :  { %2397 = vmatmul.mubr.msk.bf16.vlgmr.msra.gmra.mrb[24].mxu0 %vm281_vm10, %v1520_v30 }
0x1a87   :  { %1705 = vmatpush1.bf16.msra.mxu0 %v3137_v34  ;;  %1736 = vmatprep.mubr.bf16.mxu0 %v2712_v2 }
0x1a88   :  { %1706 = vmatprep.subr.bf16.mxu0 %v3147_v36 }
0x1a8b   :  { %1707 = vmatpush1.bf16.msra.mxu0 %v3155_v60 }
0x1a8c   :  { %1708 = vmatprep.subr.bf16.mxu0 %v3165_v43 }
0x1a8f   :  { %1709 = vmatpush1.bf16.msra.mxu0 %v3173_v46 }
0x1a90   :  { %1710 = vmatprep.subr.bf16.mxu0 %v3183_v48 }
0x1a93   :  { %1711 = vmatpush1.bf16.msra.mxu0 %v3191_v50 }
0x1a94   :  { %1883 = vmatprep.subr.bf16.mxu0 %v3129_v29 }
0x1b59   :  { %v1558_v62 = vpop.f32.mrb[24].mxu0 }
0x1b5a   :  { %v1560_v0 = vpop.f32.mrb[25].mxu0  ;;  %v1567_v38 = vrot.slane %v1558_v62, 4 }
0x1b5b   :  { %v1568_v59 = vrot.slane %v1560_v0, 4  ;;  %v1562_v1 = vpop.f32.mrb[26].mxu0 }
0x1b5c   :  { %v1563_v4 = vpop.f32.mrb[27].mxu0  ;;  %v1571_v21 = vadd.f32 %v1567_v38, %v3380_v14 }
0x1b5d   :  { %v1572_v5 = vadd.f32 %v1568_v59, %v3370_v51 }
0x1b5e   :  { %v1573_v22 = vsub.f32 0.0, %v1571_v21 }
0x1b5f   :  { %v1574_v40 = vsub.f32 0.0, %v1572_v5 }
0x1b60   :  { %v1575_v23 = vmul.f32 1.442695, %v1573_v22 }
0x1b61   :  { %v1577_v6 = vmul.f32 1.442695, %v1574_v40 }
0x1b63   :  { %2628 = vpow2.f32 %v1577_v6 }
0x1b64   :  { %2630 = vtanh.f32 %v1572_v5 }
0x1b6d   :  { %v2629_v16 = vpop.eup %2628 }
0x1b6e   :  { %v1580_v12 = vadd.f32 1.0, %v2629_v16  ;;  %v2631_v29 = vpop.eup %2630 }
0x1b70   :  { %2632 = vrcp.f32 %v1580_v12 }
0x1b71   :  { %2634 = vpow2.f32 %v1575_v23 }
0x1b7a   :  { %v2633_v13 = vpop.eup %2632 }
0x1b7b   :  { %v1586_v47 = vsel %vm61_vm1, %v2633_v13, %v2631_v29  ;;  %v2635_v45 = vpop.eup %2634 }
0x1b7c   :  { %1592 = vrot.lane.b32.xlu1 %v1586_v47, %s2713_s2  ;;  %v1579_v24 = vadd.f32 1.0, %v2635_v45 }
0x1b7e   :  { %2636 = vrcp.f32 %v1579_v24 }
0x1b88   :  { %v2637_v25 = vpop.eup %2636 }
0x1b89   :  { %v1590_v42 = vmul.f32 %v2637_v25, %v1588_v35 }
0x1bee   :  { %v1593_v26 = vpop.permute.xlu1 %1592 }
0x1bef   :  { %v1595_v32 = vmul.f32 %v2637_v25, %v1593_v26 }
0x1bf1   :  { %1597 = vrot.lane.b32.xlu0 %v1595_v32, %s2713_s2 }
0x1c63   :  { %v1598_v44 = vpop.permute.xlu0 %1597 }
0x1c64   :  { %v1600_v20 = vadd.f32 %v1598_v44, %v1590_v42 }
0x1c66   :  { %2638 = vtanh.f32 %v1600_v20 }
0x1c70   :  { %v2639_v58 = vpop.eup %2638 }
0x1c71   :  { %1603 = vrot.lane.b32.xlu1 %v2639_v58, %s2713_s2 }
0x1ce3   :  { %v1604_v19 = vpop.permute.xlu1 %1603 }
0x1ce4   :  { %v3385_v49 = vmul.f32 %v1604_v19, %v1586_v47  ;;  %v1677_v47 = vrot.slane %v1600_v20, 1 }
0x1ce6   :  { %v1607_v52 = vpack.c.bf16 %v3385_v49, %v3385_v49 }
0x1ce8   :  { %v1609_v55 = vrot.slane %v1607_v52, 2 }
0x1cea   :  { %2398 = vmatmul.mubr.msk.bf16.vlgmr.msra.gmra.mrb[28].mxu1 %vm281_vm10, %v1609_v55 }
0x1ceb   :  { %1794 = vmatpush1.bf16.msra.mxu1 %v3137_v34  ;;  %1825 = vmatprep.mubr.bf16.mxu1 %v2712_v2 }
0x1cec   :  { %1795 = vmatprep.subr.bf16.mxu1 %v3147_v36 }
0x1cef   :  { %1796 = vmatpush1.bf16.msra.mxu1 %v3155_v60 }
0x1cf0   :  { %1797 = vmatprep.subr.bf16.mxu1 %v3165_v43 }
0x1cf3   :  { %1798 = vmatpush1.bf16.msra.mxu1 %v3173_v46 }
0x1cf4   :  { %1799 = vmatprep.subr.bf16.mxu1 %v3183_v48 }
0x1cf7   :  { %1800 = vmatpush1.bf16.msra.mxu1 %v3191_v50 }
0x1dbd   :  { %v1647_v33 = vpop.f32.mrb[28].mxu1 }
0x1dbe   :  { %v1649_v10 = vpop.f32.mrb[29].mxu1  ;;  %v1656_v4 = vrot.slane %v1647_v33, 5 }
0x1dbf   :  { %v1657_v11 = vrot.slane %v1649_v10, 5  ;;  %v1651_v37 = vpop.f32.mrb[30].mxu1 }
0x1dc0   :  { %v1652_v15 = vpop.f32.mrb[31].mxu1  ;;  %v1660_v5 = vadd.f32 %v1656_v4, %v3281_v61 }
0x1dc1   :  { %v1661_v53 = vadd.f32 %v1657_v11, %v3268_v56 }
0x1dc2   :  { %v1662_v40 = vsub.f32 0.0, %v1660_v5 }
0x1dc3   :  { %v1663_v57 = vsub.f32 0.0, %v1661_v53 }
0x1dc4   :  { %v1664_v6 = vmul.f32 1.442695, %v1662_v40 }
0x1dc5   :  { %v1666_v30 = vmul.f32 1.442695, %v1663_v57 }
0x1dc7   :  { %2640 = vpow2.f32 %v1666_v30 }
0x1dc8   :  { %2642 = vtanh.f32 %v1661_v53 }
0x1dd1   :  { %v2641_v3 = vpop.eup %2640 }
0x1dd2   :  { %v1669_v62 = vadd.f32 1.0, %v2641_v3  ;;  %v2643_v0 = vpop.eup %2642 }
0x1dd4   :  { %2644 = vrcp.f32 %v1669_v62 }
0x1dd5   :  { %2646 = vpow2.f32 %v1664_v6 }
0x1dde   :  { %v2645_v59 = vpop.eup %2644 }
0x1ddf   :  { %v1675_v1 = vsel %vm61_vm1, %v2645_v59, %v2643_v0  ;;  %v2647_v56 = vpop.eup %2646 }
0x1de0   :  { %1681 = vrot.lane.b32.xlu0 %v1675_v1, %s2713_s2  ;;  %v1668_v16 = vadd.f32 1.0, %v2647_v56 }
0x1de2   :  { %2648 = vrcp.f32 %v1668_v16 }
0x1dec   :  { %v2649_v12 = vpop.eup %2648 }
0x1ded   :  { %v1679_v41 = vmul.f32 %v2649_v12, %v1677_v47 }
0x1e52   :  { %v1682_v29 = vpop.permute.xlu0 %1681 }
0x1e53   :  { %v1684_v13 = vmul.f32 %v2649_v12, %v1682_v29 }
0x1e55   :  { %1686 = vrot.lane.b32.xlu1 %v1684_v13, %s2713_s2 }
0x1ec7   :  { %v1687_v38 = vpop.permute.xlu1 %1686 }
0x1ec8   :  { %v1689_v21 = vadd.f32 %v1687_v38, %v1679_v41 }
0x1eca   :  { %2650 = vtanh.f32 %v1689_v21  ;;  %v1768_v37 = vrot.slane %v1689_v21, 1 }
0x1ed4   :  { %v2651_v22 = vpop.eup %2650 }
0x1ed5   :  { %1692 = vrot.lane.b32.xlu0 %v2651_v22, %s2713_s2 }
0x1f47   :  { %v1693_v61 = vpop.permute.xlu0 %1692 }
0x1f48   :  { %v3405_v23 = vmul.f32 %v1693_v61, %v1675_v1 }
0x1f4a   :  { %v1696_v45 = vpack.c.bf16 %v3405_v23, %v3405_v23 }
0x1f4c   :  { %v1698_v24 = vshrl.u32 %v1696_v45, 16 }
0x1f4e   :  { %v1700_v25 = vrot.slane %v1698_v24, 1 }
0x1f50   :  { %2399 = vmatmul.mubr.msk.bf16.vlgmr.msra.gmra.mrb[28].mxu0 %vm281_vm10, %v1700_v25 }
0x1f51   :  { %1884 = vmatpush1.bf16.msra.mxu0 %v3137_v34  ;;  %1915 = vmatprep.mubr.bf16.mxu0 %v2712_v2 }
0x1f52   :  { %1885 = vmatprep.subr.bf16.mxu0 %v3147_v36 }
0x1f55   :  { %1886 = vmatpush1.bf16.msra.mxu0 %v3155_v60 }
0x1f56   :  { %1887 = vmatprep.subr.bf16.mxu0 %v3165_v43 }
0x1f59   :  { %1888 = vmatpush1.bf16.msra.mxu0 %v3173_v46 }
0x1f5a   :  { %1889 = vmatprep.subr.bf16.mxu0 %v3183_v48 }
0x1f5d   :  { %1890 = vmatpush1.bf16.msra.mxu0 %v3191_v50 }
0x2023   :  { %v1738_v26 = vpop.f32.mrb[28].mxu0 }
0x2024   :  { %v1740_v32 = vpop.f32.mrb[29].mxu0  ;;  %v1747_v50 = vrot.slane %v1738_v26, 6 }
0x2025   :  { %v1748_v35 = vrot.slane %v1740_v32, 6  ;;  %v1742_v42 = vpop.f32.mrb[30].mxu0 }
0x2026   :  { %v1743_v44 = vpop.f32.mrb[31].mxu0  ;;  %v1751_v58 = vadd.f32 %v1747_v50, %v3314_v8 }
0x2027   :  { %v1752_v34 = vadd.f32 %v1748_v35, %v3304_v7 }
0x2028   :  { %v1753_v19 = vsub.f32 0.0, %v1751_v58 }
0x2029   :  { %v1754_v2 = vsub.f32 0.0, %v1752_v34 }
0x202a   :  { %v1755_v52 = vmul.f32 1.442695, %v1753_v19 }
0x202b   :  { %v1757_v20 = vmul.f32 1.442695, %v1754_v2 }
0x202d   :  { %2652 = vpow2.f32 %v1757_v20 }
0x202e   :  { %2654 = vtanh.f32 %v1752_v34 }
0x2037   :  { %v2653_v36 = vpop.eup %2652 }
0x2038   :  { %v1760_v60 = vadd.f32 1.0, %v2653_v36  ;;  %v2655_v43 = vpop.eup %2654 }
0x203a   :  { %2656 = vrcp.f32 %v1760_v60 }
0x203b   :  { %2658 = vpow2.f32 %v1755_v52 }
0x2044   :  { %v2657_v46 = vpop.eup %2656 }
0x2045   :  { %v1766_v48 = vsel %vm61_vm1, %v2657_v46, %v2655_v43  ;;  %v2659_v7 = vpop.eup %2658 }
0x2046   :  { %1772 = vrot.lane.b32.xlu1 %v1766_v48, %s2713_s2  ;;  %v1759_v55 = vadd.f32 1.0, %v2659_v7 }
0x2048   :  { %2660 = vrcp.f32 %v1759_v55 }
0x2052   :  { %v2661_v33 = vpop.eup %2660 }
0x2053   :  { %v1770_v15 = vmul.f32 %v2661_v33, %v1768_v37 }
0x20b8   :  { %v1773_v10 = vpop.permute.xlu1 %1772 }
0x20b9   :  { %v1775_v11 = vmul.f32 %v2661_v33, %v1773_v10 }
0x20bb   :  { %1777 = vrot.lane.b32.xlu0 %v1775_v11, %s2713_s2 }
0x212d   :  { %v1778_v53 = vpop.permute.xlu0 %1777 }
0x212e   :  { %v1780_v57 = vadd.f32 %v1778_v53, %v1770_v15 }
0x2130   :  { %2662 = vtanh.f32 %v1780_v57  ;;  %v1857_v32 = vrot.slane %v1780_v57, 1 }
0x213a   :  { %v2663_v30 = vpop.eup %2662 }
0x213b   :  { %1783 = vrot.lane.b32.xlu1 %v2663_v30, %s2713_s2 }
0x21ad   :  { %v1784_v8 = vpop.permute.xlu1 %1783 }
0x21ae   :  { %v3425_v3 = vmul.f32 %v1784_v8, %v1766_v48 }
0x21b0   :  { %v1787_v62 = vpack.c.bf16 %v3425_v3, %v3425_v3 }
0x21b2   :  { %v1789_v0 = vrot.slane %v1787_v62, 1 }
0x21b4   :  { %2400 = vmatmul.mubr.msk.bf16.vlgmr.msra.gmra.mrb[32].mxu1 %vm281_vm10, %v1789_v0 }
0x2287   :  { %v1827_v59 = vpop.f32.mrb[32].mxu1 }
0x2288   :  { %v1829_v1 = vpop.f32.mrb[33].mxu1  ;;  %v1836_v38 = vrot.slane %v1827_v59, 7 }
0x2289   :  { %v1837_v4 = vrot.slane %v1829_v1, 7  ;;  %v1831_v5 = vpop.f32.mrb[34].mxu1  ;;  %v2492_v1 = vld [vmem:[%s3549_s7] sm:$0xff]  }
0x228a   :  { %v1832_v40 = vpop.f32.mrb[35].mxu1  ;;  %v1840_v21 = vadd.f32 %v1836_v38, %v3347_v39  ;;  %v2494_v5 = vld [vmem:[%s3549_s7 + $0x10] sm:$0xff]   ;;  %v1977_v38 = vrot.slane %v3385_v49, 1 }
0x228b   :  { %v1841_v6 = vadd.f32 %v1837_v4, %v3337_v18  ;;  %v2493_v4 = vld [vmem:[%s3549_s7 + $0x8] sm:$0xff]  }
0x228c   :  { %v1842_v22 = vsub.f32 0.0, %v1840_v21 }
0x228d   :  { %v1843_v56 = vsub.f32 0.0, %v1841_v6 }
0x228e   :  { %v1844_v61 = vmul.f32 1.442695, %v1842_v22  ;;  %v1981_v22 = vrot.slane %v3352_v17, 3 }
0x228f   :  { %v1846_v16 = vmul.f32 1.442695, %v1843_v56 }
0x2291   :  { %2664 = vpow2.f32 %v1846_v16  ;;  %v1969_v16 = vrot.slane %v3425_v3, 5 }
0x2292   :  { %2666 = vtanh.f32 %v1841_v6  ;;  %v2495_v6 = vld [vmem:[%s3549_s7 + $0x18] sm:$0xff]  }
0x2293   :  { %v1971_v21 = vsel %vm74_vm11, %v3352_v17, %v1969_v16  ;;  %v1983_v17 = vsel %vm74_vm11, %v3425_v3, %v1981_v22 }
0x229b   :  { %v2665_v12 = vpop.eup %2664 }
0x229c   :  { %v1849_v29 = vadd.f32 1.0, %v2665_v12  ;;  %v2667_v13 = vpop.eup %2666 }
0x229e   :  { %2668 = vrcp.f32 %v1849_v29  ;;  %v1973_v29 = vrot.slane %v3405_v23, 7 }
0x229f   :  { %2670 = vpow2.f32 %v1844_v61 }
0x22a0   :  { %v1975_v61 = vsel %vm74_vm11, %v3385_v49, %v1973_v29 }
0x22a1   :  { %v2002_v49 = vrot.slane %v1975_v61, 1 }
0x22a8   :  { %v2669_v47 = vpop.eup %2668 }
0x22a9   :  { %v1855_v41 = vsel %vm61_vm1, %v2669_v47, %v2667_v13  ;;  %v2671_v18 = vpop.eup %2670 }
0x22aa   :  { %1861 = vrot.lane.b32.xlu0 %v1855_v41, %s2713_s2  ;;  %v1848_v45 = vadd.f32 1.0, %v2671_v18 }
0x22ac   :  { %2672 = vrcp.f32 %v1848_v45  ;;  %v1985_v45 = vrot.slane %v3319_v63, 5 }
0x22b6   :  { %v2673_v24 = vpop.eup %2672 }
0x22b7   :  { %v1859_v35 = vmul.f32 %v2673_v24, %v1857_v32  ;;  %v1989_v32 = vrot.slane %v3286_v9, 7 }
0x231c   :  { %v1862_v25 = vpop.permute.xlu0 %1861 }
0x231d   :  { %v1864_v26 = vmul.f32 %v2673_v24, %v1862_v25  ;;  %v1979_v24 = vsel %vm74_vm11, %v3405_v23, %v1977_v38 }
0x231f   :  { %1866 = vrot.lane.b32.xlu1 %v1864_v26, %s2713_s2 }
0x2391   :  { %v1867_v42 = vpop.permute.xlu1 %1866 }
0x2392   :  { %v1869_v44 = vadd.f32 %v1867_v42, %v1859_v35  ;;  %v1999_v35 = vrot.slane %v1971_v21, 3 }
0x2394   :  { %2674 = vtanh.f32 %v1869_v44  ;;  %v1941_v62 = vrot.slane %v1869_v44, 1  ;;  %v2005_v44 = vrot.slane %v1979_v24, 7 }
0x239e   :  { %v2675_v34 = vpop.eup %2674 }
0x239f   :  { %1872 = vrot.lane.b32.xlu0 %v2675_v34, %s2713_s2 }
0x2411   :  { %v1873_v39 = vpop.permute.xlu0 %1872 }
0x2412   :  { %v3437_v2 = vmul.f32 %v1873_v39, %v1855_v41  ;;  %v2008_v39 = vrot.slane %v1983_v17, 5 }
0x2414   :  { %v1876_v20 = vpack.c.bf16 %v3437_v2, %v3437_v2  ;;  %v1965_v56 = vrot.slane %v3437_v2, 3  ;;  %v1987_v42 = vsel %vm74_vm11, %v3437_v2, %v1985_v45 }
0x2416   :  { %v1878_v36 = vshrl.u32 %v1876_v20, 16  ;;  %v1967_v47 = vsel %vm74_vm11, %v3319_v63, %v1965_v56  ;;  %v2011_v20 = vrot.slane %v1987_v42, 3 }
0x2417   :  { %v1996_v25 = vrot.slane %v1967_v47, 5 }
0x2418   :  { %2401 = vmatmul.mubr.msk.bf16.vlgmr.msra.gmra.mrb[32].mxu0 %vm281_vm10, %v1878_v36 }
0x24eb   :  { %v1917_v60 = vpop.f32.mrb[32].mxu0 }
0x24ec   :  { %v1919_v43 = vpop.f32.mrb[33].mxu0  ;;  %v1924_v11 = vadd.f32 %v1917_v60, %v3380_v14  ;;  %v2714_v14 = vmov 0.0  }
0x24ed   :  { %v1925_v46 = vadd.f32 %v1919_v43, %v3370_v51  ;;  %v1921_v48 = vpop.f32.mrb[34].mxu0  ;;  %2414 = vmatprep.subr.bf16.mxu1 %v2714_v14 }
0x24ee   :  { %v1922_v50 = vpop.f32.mrb[35].mxu0  ;;  %v1926_v37 = vsub.f32 0.0, %v1924_v11  ;;  %2415 = vmatpush3.bf16.msra.mxu1 %v2492_v1 }
0x24ef   :  { %v1927_v58 = vsub.f32 0.0, %v1925_v46  ;;  %2416 = vmatprep.subr.bf16.mxu1 %v2714_v14 }
0x24f0   :  { %v1928_v51 = vmul.f32 1.442695, %v1926_v37 }
0x24f1   :  { %v1930_v19 = vmul.f32 1.442695, %v1927_v58 }
0x24f2   :  { %2417 = vmatpush3.bf16.msra.mxu1 %v2493_v4 }
0x24f3   :  { %2676 = vpow2.f32 %v1930_v19  ;;  %2418 = vmatprep.subr.bf16.mxu1 %v2714_v14 }
0x24f4   :  { %2678 = vtanh.f32 %v1925_v46 }
0x24f6   :  { %2419 = vmatpush3.bf16.msra.mxu1 %v2494_v5 }
0x24f7   :  { %2420 = vmatprep.subr.bf16.mxu1 %v2714_v14 }
0x24fa   :  { %2421 = vmatpush3.bf16.msra.mxu1 %v2495_v6  ;;  %v2407_v6 = vld [vmem:[%s3550_s8] ss:$0 sm:$0xff] }
0x24fd   :  { %v2677_v52 = vpop.eup %2676 }
0x24fe   :  { %v1933_v7 = vadd.f32 1.0, %v2677_v52  ;;  %v2679_v55 = vpop.eup %2678  ;;  %v2716_v52 = vmov 1966171168  }
0x2500   :  { %2680 = vrcp.f32 %v1933_v7  ;;  %v2102_v7 = vunpack.c.l.s4 %v2716_v52 }
0x2501   :  { %2682 = vpow2.f32 %v1928_v51 }
0x250a   :  { %v2681_v33 = vpop.eup %2680 }
0x250b   :  { %v1939_v10 = vsel %vm61_vm1, %v2681_v33, %v2679_v55  ;;  %v2683_v15 = vpop.eup %2682  ;;  %vm2715_vm1 = vmmov 0   ;;  %v2103_v55 = vunpack.c.0.s8 %v2102_v7 }
0x250c   :  { %1945 = vrot.lane.b32.xlu1 %v1939_v10, %s2713_s2  ;;  %v1932_v53 = vadd.f32 1.0, %v2683_v15  ;;  %2422 = vmatprep.mubr.msk.bf16.mxu1 %vm2715_vm1, %v2714_v14 }
0x250d   :  { %v2106_v33 = vsub.s32 %v2103_v55, %v2902_v28 }
0x250e   :  { %2684 = vrcp.f32 %v1932_v53 }
0x2518   :  { %v2685_v57 = vpop.eup %2684 }
0x2519   :  { %v1943_v0 = vmul.f32 %v2685_v57, %v1941_v62 }
0x257e   :  { %v1946_v30 = vpop.permute.xlu1 %1945 }
0x257f   :  { %v1948_v8 = vmul.f32 %v2685_v57, %v1946_v30 }
0x2581   :  { %1950 = vrot.lane.b32.xlu0 %v1948_v8, %s2713_s2 }
0x25f3   :  { %v1951_v59 = vpop.permute.xlu0 %1950 }
0x25f4   :  { %v1953_v31 = vadd.f32 %v1951_v59, %v1943_v0 }
0x25f6   :  { %2686 = vtanh.f32 %v1953_v31 }
0x2600   :  { %v2687_v40 = vpop.eup %2686 }
0x2601   :  { %1956 = vrot.lane.b32.xlu1 %v2687_v40, %s2713_s2 }
0x2673   :  { %v1957_v12 = vpop.permute.xlu1 %1956 }
0x2674   :  { %v1959_v13 = vmul.f32 %v1957_v12, %v1939_v10 }
0x2676   :  { %v1961_v41 = vrot.slane %v1959_v13, 1  ;;  %v1991_v23 = vsel %vm74_vm11, %v1959_v13, %v1989_v32 }
0x2677   :  { %v2014_v36 = vrot.slane %v1991_v23, 1 }
0x2678   :  { %v1963_v18 = vsel %vm74_vm11, %v3286_v9, %v1961_v41  ;;  %vm2274_vm11 = vcmp.eq.s32.totalorder %v2902_v28, %v2900_v27 }
0x2679   :  { %v1993_v26 = vrot.slane %v1963_v18, 7 }
0x267b   :  { %v2016_v63 = vsel %vm1063_vm12, %v1993_v26, %v1996_v25  ;;  %v2408_v25 = vld [vmem:[%s3551_s9] ss:$0 sm:$0xff]  ;;  %vm2331_vm12 = vcmask 64512  }
0x267c   :  { %v2017_v34 = vsel %vm1065_vm13, %v2016_v63, %v1999_v35 }
0x267d   :  { %v2018_v9 = vsel %vm1067_vm14, %v2017_v34, %v2002_v49 }
0x267e   :  { %v2019_v3 = vsel %vm1069_vm15, %v2018_v9, %v2005_v44 }
0x267f   :  { %v2020_v60 = vsel %vm1071_vm0, %v2019_v3, %v2008_v39 }
0x2680   :  { %v2021_v43 = vsel %vm1073_vm2, %v2020_v60, %v2011_v20 }
0x2681   :  { %v2022_v2 = vsel %vm1075_vm3, %v2021_v43, %v2014_v36 }
0x2682   :  { %v2023_v46 = vpack.c.bf16 %v2022_v2, %v2022_v2 }
0x2684   :  { %2423 = vmatmul.mubr.msk.bf16.vlgmr.msra.gmra.mrb[36].mxu1 %vm281_vm10, %v2023_v46 }
0x2757   :  { %v2093_v48 = vpop.f32.mrb[36].mxu1 }
0x2758   :  { %2189 = vrot.lane.b32.xlu0 %v2093_v48, %s2713_s2  ;;  %v2424_v50 = vpop.f32.mrb[37].mxu1  ;;  %v2100_v10 = vcombine.high %v2093_v48, %v2093_v48  ;;  %v2107_v11 = vrot.slane %v2093_v48, %v2106_v33 }
0x2759   :  { %v2096_v58 = vpop.f32.mrb[38].mxu1 }
0x275a   :  { %v2425_v19 = vpop.f32.mrb[39].mxu1  ;;  %v2114_v37 = vrot.slane %v2100_v10, %v2106_v33  ;;  %v2115_v51 = vcombine.high %v2107_v11, %v2107_v11  ;;  %v2123_v53 = vrot.slane %v2107_v11, %v2106_v33 }
0x275c   :  { %v2116_v15 = vcombine.high %v2114_v37, %v2114_v37  ;;  %v2137_v57 = vrot.slane %v2115_v51, %v2106_v33  ;;  %v2130_v30 = vrot.slane %v2114_v37, %v2106_v33  ;;  %v2145_v62 = vcombine.high %v2123_v53, %v2123_v53 }
0x275d   :  { %v2152_v1 = vrot.slane %v2123_v53, %v2935_v54  ;;  %v2263_v37 = vstv %s3552_s10  ;;  %v2285_v51 = vsub.s32 %v2900_v27, %v2902_v28  ;;  %s2717_s10 = smov [#allocation3]  }
0x275e   :  { %v2144_v8 = vrot.slane %v2116_v15, %v2106_v33  ;;  %v2147_v0 = vcombine.high %v2137_v57, %v2137_v57  ;;  %v2146_v59 = vcombine.high %v2130_v30, %v2130_v30  ;;  %v2156_v14 = vrot.slane %v2137_v57, %v2935_v54  ;;  %s2339_s27 = sshll.u32 %s2717_s10, 4  ;;  %s2340_s27 = int_to_ptr.vmem [resolvable:$true] %s2339_s27 }
0x275f   :  { %v2160_v4 = vrot.slane %v2145_v62, %v2935_v54  ;;  %v2168_v56 = vrot.slane %v2130_v30, %v2935_v54  ;;  %s2688_s0 = scalar_lea.vmem %s2340_s27, 128  ;;  %p2693_p1 = scmp.lt.s32.totalorder %s2340_s27, %s2340_s27 }
0x2760   :  { %v2148_v31 = vcombine.high %v2144_v8, %v2144_v8  ;;  %v2164_v5 = vrot.slane %v2147_v0, %v2935_v54  ;;  %v2172_v16 = vrot.slane %v2144_v8, %v2935_v54  ;;  %v2176_v21 = vrot.slane %v2146_v59, %v2935_v54  ;;  %p2689_p0 = scmp.ne.s32.totalorder %s2340_s27, %s2688_s0  ;;  %p2694_p2 = scmp.lt.s32.totalorder %s2688_s0, %s2688_s0 }
0x2762   :  { %v2180_v22 = vrot.slane %v2148_v31, %v2935_v54  ;;  %p2695_p3 = por %p2694_p2, %p2693_p1 }
0x2764   :  { %p2696_p4 = pnand %p2695_p3, %p2689_p0 }
0x27ca   :  { %v2190_v40 = vpop.permute.xlu0 %2189 }
0x27cb   :  { %v2192_v12 = vadd.f32 %v2190_v40, %v2152_v1  ;;  %v2193_v29 = vadd.f32 %v2190_v40, %v2156_v14  ;;  %v2194_v13 = vadd.f32 %v2190_v40, %v2160_v4  ;;  %v2195_v47 = vadd.f32 %v2190_v40, %v2164_v5 }
0x27cc   :  { %v2196_v41 = vadd.f32 %v2190_v40, %v2168_v56  ;;  %v2197_v38 = vadd.f32 %v2190_v40, %v2172_v16  ;;  %v2198_v17 = vadd.f32 %v2190_v40, %v2176_v21  ;;  %v2199_v35 = vadd.f32 %v2190_v40, %v2180_v22 }
0x27cd   :  { %v2207_v61 = vadd.f32 %v2407_v6, %v2192_v12  ;;  %v2208_v18 = vadd.f32 %v2407_v6, %v2193_v29  ;;  %v2209_v45 = vadd.f32 %v2407_v6, %v2194_v13  ;;  %v2210_v24 = vadd.f32 %v2407_v6, %v2195_v47 }
0x27ce   :  { %v2211_v26 = vadd.f32 %v2407_v6, %v2196_v41  ;;  %v2212_v32 = vadd.f32 %v2407_v6, %v2197_v38  ;;  %v2213_v9 = vadd.f32 %v2407_v6, %v2198_v17  ;;  %v2214_v20 = vadd.f32 %v2407_v6, %v2199_v35 }
0x27cf   :  { %v2215_v49 = vmax.f32 %v2207_v61, 0.0  ;;  %v2216_v42 = vmax.f32 %v2208_v18, 0.0  ;;  %v2217_v63 = vmax.f32 %v2209_v45, 0.0  ;;  %v2218_v44 = vmax.f32 %v2210_v24, 0.0 }
0x27d0   :  { %v2219_v39 = vmax.f32 %v2211_v26, 0.0  ;;  %v2220_v54 = vmax.f32 %v2212_v32, 0.0  ;;  %v2221_v2 = vmax.f32 %v2213_v9, 0.0  ;;  %v2222_v46 = vmax.f32 %v2214_v20, 0.0 }
0x27d1   :  { %v2230_v23 = vmul.f32 %v2408_v25, %v2215_v49  ;;  %v2231_v34 = vmul.f32 %v2408_v25, %v2216_v42  ;;  %v2232_v60 = vmul.f32 %v2408_v25, %v2217_v63  ;;  %v2233_v43 = vmul.f32 %v2408_v25, %v2218_v44 }
0x27d2   :  { %v2234_v58 = vmul.f32 %v2408_v25, %v2219_v39  ;;  %v2235_v19 = vmul.f32 %v2408_v25, %v2220_v54  ;;  %v2236_v55 = vmul.f32 %v2408_v25, %v2221_v2  ;;  %v2237_v33 = vmul.f32 %v2408_v25, %v2222_v46 }
0x27d3   :  { %v2238_v3 = vsel %vm281_vm10, %v2230_v23, 0.0  ;;  %v2241_v36 = vsel %vm281_vm10, %v2231_v34, 0.0  ;;  %v2244_v48 = vsel %vm281_vm10, %v2232_v60, 0.0  ;;  %v2247_v50 = vsel %vm281_vm10, %v2233_v43, 0.0 }
0x27d4   :  { %2239 = vadd.xlane.f32.xlu1 %v2238_v3  ;;  %2242 = vadd.xlane.f32.xlu0 %v2241_v36  ;;  %v2250_v52 = vsel %vm281_vm10, %v2234_v58, 0.0  ;;  %v2253_v7 = vsel %vm281_vm10, %v2235_v19, 0.0  ;;  %v2256_v10 = vsel %vm281_vm10, %v2236_v55, 0.0  ;;  %v2259_v11 = vsel %vm281_vm10, %v2237_v33, 0.0 }
0x27d5   :  { %vm2327_vm10 = vcmask 1047559  }
0x27d8   :  { %2245 = vadd.xlane.f32.xlu0 %v2244_v48  ;;  %2248 = vadd.xlane.f32.xlu1 %v2247_v50 }
0x27dc   :  { %2251 = vadd.xlane.f32.xlu0 %v2250_v52  ;;  %2254 = vadd.xlane.f32.xlu1 %v2253_v7 }
0x27e0   :  { %2257 = vadd.xlane.f32.xlu0 %v2256_v10  ;;  %2260 = vadd.xlane.f32.xlu1 %v2259_v11 }
0x2861   :  { %v2240_v15 = vpop.xlane.xlu1 %2239  ;;  %v2243_v53 = vpop.xlane.xlu0 %2242 }
0x2862   :  { %v2264_v57 = vadd.f32 %v2263_v37, %v2240_v15  ;;  %v2265_v30 = vadd.f32 %v2263_v37, %v2243_v53 }
0x2864   :  { %v2286_v8 = vrot.slane %v2264_v57, %v2285_v51  ;;  %v2290_v62 = vrot.slane %v2265_v30, %v2285_v51 }
0x2865   :  { %v2246_v0 = vpop.xlane.xlu0 %2245  ;;  %v2249_v59 = vpop.xlane.xlu1 %2248 }
0x2866   :  { %v2266_v31 = vadd.f32 %v2263_v37, %v2246_v0  ;;  %v2267_v1 = vadd.f32 %v2263_v37, %v2249_v59  ;;  %v2316_v4 = vsel %vm2315_vm4, %v2290_v62, %v2286_v8 }
0x2868   :  { %v2294_v14 = vrot.slane %v2266_v31, %v2285_v51  ;;  %v2298_v5 = vrot.slane %v2267_v1, %v2285_v51 }
0x2869   :  { %v2252_v40 = vpop.xlane.xlu0 %2251  ;;  %v2255_v6 = vpop.xlane.xlu1 %2254 }
0x286a   :  { %v2318_v56 = vsel %vm2317_vm5, %v2294_v14, %v2316_v4  ;;  %v2268_v16 = vadd.f32 %v2263_v37, %v2252_v40  ;;  %v2269_v12 = vadd.f32 %v2263_v37, %v2255_v6 }
0x286b   :  { %v2320_v13 = vsel %vm2319_vm6, %v2298_v5, %v2318_v56 }
0x286c   :  { %v2302_v29 = vrot.slane %v2268_v16, %v2285_v51  ;;  %v2306_v47 = vrot.slane %v2269_v12, %v2285_v51 }
0x286d   :  { %v2258_v41 = vpop.xlane.xlu0 %2257  ;;  %v2261_v38 = vpop.xlane.xlu1 %2260 }
0x286e   :  { %v2322_v21 = vsel %vm2321_vm7, %v2302_v29, %v2320_v13  ;;  %v2270_v22 = vadd.f32 %v2263_v37, %v2258_v41  ;;  %v2271_v61 = vadd.f32 %v2263_v37, %v2261_v38 }
0x286f   :  { %v2324_v24 = vsel %vm2323_vm8, %v2306_v47, %v2322_v21 }
0x2870   :  { %v2310_v18 = vrot.slane %v2270_v22, %v2285_v51  ;;  %v2314_v45 = vrot.slane %v2271_v61, %v2285_v51 }
0x2872   :  { %v2326_v25 = vsel %vm2325_vm9, %v2310_v18, %v2324_v24 }
0x2873   :  { %v2328_v26 = vsel %vm2327_vm10, %v2314_v45, %v2326_v25 }
0x2874   :  { %v2330_v32 = vsel %vm2274_vm11, 0.0, %v2328_v26 }
0x2875   :  { %2332 = vst.msk [vmem:[#allocation3] sm:$0xff] %vm2331_vm12, %v2330_v32 }
0x2876   :  { %2699 = shalt.err (!%p2696_p4)
}
0x2877   :  { %s2700_s29 = scalar_lea.hbm %s3553_s11, 128 }
0x2878   :  { %p2701_p5 = scmp.ne.s32.totalorder %s3553_s11, %s2700_s29  ;;  %p2704_p6 = scmp.lt.u32.totalorder %s2700_s29, %s3553_s11 }
0x287a   :  { %p2706_p7 = pnand %p2704_p6, %p2701_p5 }
0x287c   :  { %2709 = shalt.err (!%p2706_p7)
}
0x287d   :  { %2342 = dma.vmem_to_hbm [thread:$0]  %s2340_s27, 128, %s3553_s11, [#allocation4]  }
0x287e   :  { %2710 = dma.done.wait [#allocation4], 128  }
0x287f   :  { %2711 = vsyncadd [#allocation4], 4294967168 }
0x2880   :  { %2346 = vsyncpa [#allocation4], 1 }

</bundles_post_ra>
